<compile_context>
chip_gen: v5e
topology: v5e:2x2
jax: 0.10.0
libtpu: 0.0.40
codegen_flags: <defaults>
</compile_context>

<pallas_src>
import functools

import jax
import jax.numpy as jnp
from jax import lax
from jax.experimental import pallas as pl
from jax.experimental.pallas import tpu as pltpu

SOS_TOKEN = '<sos>'
EOS_TOKEN = '<eos>'
PAD_TOKEN = '<pad>'
ALL_LETTERS = 'abcdefghijklmnopqrstuvwxyz'
CHARS = [PAD_TOKEN, SOS_TOKEN, EOS_TOKEN] + list(ALL_LETTERS)
char2idx = {ch: i for i, ch in enumerate(CHARS)}

LANE = 128


# ----------------------------------------------------------------------------
# Fused encoder + decoder + FC kernel.  Gate layout follows PyTorch [i,f,g,o].
# ----------------------------------------------------------------------------
def _seq2seq_kernel(B, S, Td,
                    esrc_ref, etgt_ref,
                    wih_e_ref, whh_e_ref, be_ref,
                    wih_d_ref, whh_d_ref, bd_ref,
                    wfc_ref, bfc_ref,
                    out_ref,
                    ig_src_ref, ig_tgt_ref, hs_ref):
    """Everything stays resident in VMEM.

    esrc_ref: (S*B, E)   embedded source, row = t*B + b (time-major, flattened)
    etgt_ref: (Td*B, E)  embedded decoder inputs (tgt[:, :-1]), same layout
    w*h_ref : transposed LSTM weights (E,4H)/(H,4H); b*_ref: (1,4H) = b_ih+b_hh
    wfc_ref : (H, Vp) fc weight with vocab padded to a lane multiple; bfc (1,Vp)
    out_ref : (Td*B, Vp) logits, row = t*B + b
    """
    f32 = jnp.float32
    H = whh_e_ref.shape[0]

    # Hoisted input projections: one MXU pass per sequence, biases folded in.
    ig_src_ref[...] = (
        jnp.dot(esrc_ref[...], wih_e_ref[...], preferred_element_type=f32)
        + be_ref[...])
    ig_tgt_ref[...] = (
        jnp.dot(etgt_ref[...], wih_d_ref[...], preferred_element_type=f32)
        + bd_ref[...])

    whh_e = whh_e_ref[...]            # (H, 4H), loaded once outside the loops
    whh_d = whh_d_ref[...]

    def lstm_step(ig_t, h, c, whh):
        # Exactly one matmul on the serial critical path per step.
        gates = ig_t + jnp.dot(h, whh, preferred_element_type=f32)   # (B, 4H)
        sig = jax.nn.sigmoid(gates)   # full-vreg EUP
        tah = jnp.tanh(gates)         # full-vreg EUP
        i_g = sig[:, 0 * H:1 * H]
        f_g = sig[:, 1 * H:2 * H]
        g_g = tah[:, 2 * H:3 * H]
        o_g = sig[:, 3 * H:4 * H]
        c_new = f_g * c + i_g * g_g
        h_new = o_g * jnp.tanh(c_new)
        return h_new, c_new

    h0 = jnp.zeros((B, H), f32)
    c0 = jnp.zeros((B, H), f32)

    # Encoder: per-step hidden states are never materialized / written out.
    def enc_body(t, carry):
        h, c = carry
        ig_t = ig_src_ref[pl.ds(t * B, B), :]
        return lstm_step(ig_t, h, c, whh_e)

    h_enc, c_enc = lax.fori_loop(0, S, enc_body, (h0, c0), unroll=True)

    # Decoder (teacher forcing): stash h_t in VMEM scratch for the batched FC.
    def dec_body(t, carry):
        h, c = carry
        ig_t = ig_tgt_ref[pl.ds(t * B, B), :]
        h_new, c_new = lstm_step(ig_t, h, c, whh_d)
        hs_ref[pl.ds(t * B, B), :] = h_new
        return h_new, c_new

    lax.fori_loop(0, Td, dec_body, (h_enc, c_enc), unroll=True)

    # Single lane-dense FC over all decoder steps (Vp is a multiple of 128).
    out_ref[...] = (
        jnp.dot(hs_ref[...], wfc_ref[...], preferred_element_type=f32)
        + bfc_ref[...])


# ----------------------------------------------------------------------------
# Full Seq2SeqLSTM forward (teacher-forcing branch: tgt is provided)
# ----------------------------------------------------------------------------
@jax.jit
def seq2seq_forward(params, src, tgt):
    """src: (B,S) int32, tgt: (B,T) int32 -> logits (B, T-1, V) float32."""
    emb = params["embedding"]                       # (V, E)
    B, S = src.shape
    Td = tgt.shape[1] - 1
    H = params["enc_w_hh"].shape[1]
    V = params["fc_w"].shape[0]
    Vp = ((V + LANE - 1) // LANE) * LANE

    # Embedding gathers (plain JAX), time-major & flattened: row index t*B + b.
    e_src = jnp.take(emb, src.T.reshape(-1), axis=0)           # (S*B, E)
    e_tgt = jnp.take(emb, tgt[:, :-1].T.reshape(-1), axis=0)   # (Td*B, E)

    # Weight prep: transpose, fold the two biases, pad vocab to a lane multiple.
    wih_e = params["enc_w_ih"].T                               # (E, 4H)
    whh_e = params["enc_w_hh"].T                               # (H, 4H)
    b_e = (params["enc_b_ih"] + params["enc_b_hh"]).reshape(1, 4 * H)
    wih_d = params["dec_w_ih"].T
    whh_d = params["dec_w_hh"].T
    b_d = (params["dec_b_ih"] + params["dec_b_hh"]).reshape(1, 4 * H)
    wfc = jnp.zeros((H, Vp), jnp.float32).at[:, :V].set(params["fc_w"].T)
    bfc = jnp.zeros((1, Vp), jnp.float32).at[0, :V].set(params["fc_b"])

    out = pl.pallas_call(
        functools.partial(_seq2seq_kernel, B, S, Td),
        out_shape=jax.ShapeDtypeStruct((Td * B, Vp), jnp.float32),
        scratch_shapes=[
            pltpu.VMEM((S * B, 4 * H), jnp.float32),    # encoder input gates
            pltpu.VMEM((Td * B, 4 * H), jnp.float32),   # decoder input gates
            pltpu.VMEM((Td * B, H), jnp.float32),       # decoder hidden states
        ],
    )(e_src, e_tgt, wih_e, whh_e, b_e, wih_d, whh_d, b_d, wfc, bfc)

    # (Td*B, Vp) -> (B, Td, V): tiny XLA reshape/transpose/slice on ~8 KB.
    return out.reshape(Td, B, Vp).transpose(1, 0, 2)[:, :, :V]

# TODO(synk): the autoregressive (tgt=None) greedy-decode branch with argmax
# feedback is data-dependent control flow and is left to plain JAX; it is not
# implemented as a Pallas kernel here.


# ----------------------------------------------------------------------------
# Pure-JAX reference (for a loose numerical sanity check) and param init.
# ----------------------------------------------------------------------------
def _reference_forward(params, src, tgt):
    emb = params["embedding"]
    H = params["enc_w_hh"].shape[1]

    def lstm(x_bte, h, c, w_ih, w_hh, b_ih, b_hh):
        def step(carry, x_t):
            h, c = carry
            g = x_t @ w_ih.T + h @ w_hh.T + b_ih + b_hh
            i = jax.nn.sigmoid(g[:, :H])
            f = jax.nn.sigmoid(g[:, H:2 * H])
            gg = jnp.tanh(g[:, 2 * H:3 * H])
            o = jax.nn.sigmoid(g[:, 3 * H:])
            c = f * c + i * gg
            h = o * jnp.tanh(c)
            return (h, c), h
        (h, c), hs = lax.scan(step, (h, c), jnp.swapaxes(x_bte, 0, 1))
        return jnp.swapaxes(hs, 0, 1), h, c

    B = src.shape[0]
    h0 = jnp.zeros((B, H), jnp.float32)
    c0 = jnp.zeros((B, H), jnp.float32)
    _, h, c = lstm(jnp.take(emb, src, axis=0), h0, c0,
                   params["enc_w_ih"], params["enc_w_hh"],
                   params["enc_b_ih"], params["enc_b_hh"])
    hs, _, _ = lstm(jnp.take(emb, tgt[:, :-1], axis=0), h, c,
                    params["dec_w_ih"], params["dec_w_hh"],
                    params["dec_b_ih"], params["dec_b_hh"])
    return hs @ params["fc_w"].T + params["fc_b"]


def init_params(key, vocab_size, embedding_dim, hidden_dim):
    ks = jax.random.split(key, 12)
    s = 1.0 / jnp.sqrt(hidden_dim)
    u = lambda k, shape: jax.random.uniform(k, shape, jnp.float32, -s, s)
    return {
        "embedding": jax.random.normal(ks[0], (vocab_size, embedding_dim),
                                       jnp.float32),
        "enc_w_ih": u(ks[1], (4 * hidden_dim, embedding_dim)),
        "enc_w_hh": u(ks[2], (4 * hidden_dim, hidden_dim)),
        "enc_b_ih": u(ks[3], (4 * hidden_dim,)),
        "enc_b_hh": u(ks[4], (4 * hidden_dim,)),
        "dec_w_ih": u(ks[5], (4 * hidden_dim, embedding_dim)),
        "dec_w_hh": u(ks[6], (4 * hidden_dim, hidden_dim)),
        "dec_b_ih": u(ks[7], (4 * hidden_dim,)),
        "dec_b_hh": u(ks[8], (4 * hidden_dim,)),
        "fc_w": u(ks[9], (vocab_size, hidden_dim)),
        "fc_b": u(ks[10], (vocab_size,)),
    }


if __name__ == "__main__":
    vocab_size = len(CHARS)        # 29
    embedding_dim = 16
    hidden_dim = 32
    B, S, T = 2, 8, 9              # src len 8, tgt len 9 (decoder sees 8 steps)

    key = jax.random.PRNGKey(0)
    kp, ks, kt = jax.random.split(key, 3)
    params = init_params(kp, vocab_size, embedding_dim, hidden_dim)

    src = jax.random.randint(ks, (B, S), 0, vocab_size, dtype=jnp.int32)
    tgt = jax.random.randint(kt, (B, T), 0, vocab_size, dtype=jnp.int32)
    tgt = tgt.at[:, 0].set(char2idx[SOS_TOKEN])

    logits = seq2seq_forward(params, src, tgt)
    jax.block_until_ready(logits)

    assert logits.shape == (B, T - 1, vocab_size), logits.shape
    assert logits.dtype == jnp.float32

    ref = _reference_forward(params, src, tgt)
    max_err = float(jnp.max(jnp.abs(logits - ref)))
    assert max_err < 5e-2, f"max abs error vs reference: {max_err}"

    print("KERNEL_OK")
</pallas_src>

<mosaic_0001>
module attributes {stable_mosaic.version = 11 : i64} {
  func.func @_seq2seq_kernel(%arg0: memref<16x16xf32, #tpu.memory_space<vmem>>, %arg1: memref<16x16xf32, #tpu.memory_space<vmem>>, %arg2: memref<16x128xf32, #tpu.memory_space<vmem>>, %arg3: memref<32x128xf32, #tpu.memory_space<vmem>>, %arg4: memref<1x128xf32, #tpu.memory_space<vmem>>, %arg5: memref<16x128xf32, #tpu.memory_space<vmem>>, %arg6: memref<32x128xf32, #tpu.memory_space<vmem>>, %arg7: memref<1x128xf32, #tpu.memory_space<vmem>>, %arg8: memref<32x128xf32, #tpu.memory_space<vmem>>, %arg9: memref<1x128xf32, #tpu.memory_space<vmem>>, %arg10: memref<16x128xf32, #tpu.memory_space<vmem>>, %arg11: memref<16x128xf32, #tpu.memory_space<vmem>>, %arg12: memref<16x128xf32, #tpu.memory_space<vmem>>, %arg13: memref<16x32xf32, #tpu.memory_space<vmem>>) attributes {dimension_semantics = [], scalar_prefetch = 0 : i64, scratch_operands = 3 : i64, tpu.core_type = #tpu.core_type<tc>} {
    %c0 = arith.constant 0 : index
    %c0_0 = arith.constant 0 : index
    %0 = vector.load %arg0[%c0, %c0_0] : memref<16x16xf32, #tpu.memory_space<vmem>>, vector<16x16xf32>
    %c0_1 = arith.constant 0 : index
    %c0_2 = arith.constant 0 : index
    %1 = vector.load %arg2[%c0_1, %c0_2] : memref<16x128xf32, #tpu.memory_space<vmem>>, vector<16x128xf32>
    %cst = arith.constant dense<0.000000e+00> : vector<16x128xf32>
    %2 = tpu.matmul %0, %1, %cst {dimension_numbers = #tpu.dot_dimension_numbers<[1], [0], [0], [1], [0, 0, 1, 1], [], []>} : vector<16x16xf32>, vector<16x128xf32>, vector<16x128xf32> -> vector<16x128xf32>
    %c0_3 = arith.constant 0 : index
    %c0_4 = arith.constant 0 : index
    %3 = vector.load %arg4[%c0_3, %c0_4] : memref<1x128xf32, #tpu.memory_space<vmem>>, vector<1x128xf32>
    %4 = vector.broadcast %3 : vector<1x128xf32> to vector<16x128xf32>
    %5 = arith.addf %2, %4 : vector<16x128xf32>
    %c0_5 = arith.constant 0 : index
    %c0_6 = arith.constant 0 : index
    %6 = vector.load %arg11[%c0_5, %c0_6] : memref<16x128xf32, #tpu.memory_space<vmem>>, vector<16x128xf32>
    tpu.vector_store %arg11[%c0_5, %c0_6], %5 {strides = array<i32>} : memref<16x128xf32, #tpu.memory_space<vmem>>, vector<16x128xf32>,
    %c0_7 = arith.constant 0 : index
    %c0_8 = arith.constant 0 : index
    %7 = vector.load %arg1[%c0_7, %c0_8] : memref<16x16xf32, #tpu.memory_space<vmem>>, vector<16x16xf32>
    %c0_9 = arith.constant 0 : index
    %c0_10 = arith.constant 0 : index
    %8 = vector.load %arg5[%c0_9, %c0_10] : memref<16x128xf32, #tpu.memory_space<vmem>>, vector<16x128xf32>
    %cst_11 = arith.constant dense<0.000000e+00> : vector<16x128xf32>
    %9 = tpu.matmul %7, %8, %cst_11 {dimension_numbers = #tpu.dot_dimension_numbers<[1], [0], [0], [1], [0, 0, 1, 1], [], []>} : vector<16x16xf32>, vector<16x128xf32>, vector<16x128xf32> -> vector<16x128xf32>
    %c0_12 = arith.constant 0 : index
    %c0_13 = arith.constant 0 : index
    %10 = vector.load %arg7[%c0_12, %c0_13] : memref<1x128xf32, #tpu.memory_space<vmem>>, vector<1x128xf32>
    %11 = vector.broadcast %10 : vector<1x128xf32> to vector<16x128xf32>
    %12 = arith.addf %9, %11 : vector<16x128xf32>
    %c0_14 = arith.constant 0 : index
    %c0_15 = arith.constant 0 : index
    %13 = vector.load %arg12[%c0_14, %c0_15] : memref<16x128xf32, #tpu.memory_space<vmem>>, vector<16x128xf32>
    tpu.vector_store %arg12[%c0_14, %c0_15], %12 {strides = array<i32>} : memref<16x128xf32, #tpu.memory_space<vmem>>, vector<16x128xf32>,
    %c0_16 = arith.constant 0 : index
    %c0_17 = arith.constant 0 : index
    %14 = vector.load %arg3[%c0_16, %c0_17] : memref<32x128xf32, #tpu.memory_space<vmem>>, vector<32x128xf32>
    %c0_18 = arith.constant 0 : index
    %c0_19 = arith.constant 0 : index
    %15 = vector.load %arg6[%c0_18, %c0_19] : memref<32x128xf32, #tpu.memory_space<vmem>>, vector<32x128xf32>
    %cst_20 = arith.constant 0.000000e+00 : f32
    %16 = vector.broadcast %cst_20 : f32 to vector<2x32xf32>
    %cst_21 = arith.constant 0.000000e+00 : f32
    %17 = vector.broadcast %cst_21 : f32 to vector<2x32xf32>
    %c0_i32 = arith.constant 0 : i32
    %c2_i32 = arith.constant 2 : i32
    %18 = arith.muli %c0_i32, %c2_i32 : i32
    %19 = arith.index_cast %18 : i32 to index
    %c0_22 = arith.constant 0 : index
    %20 = vector.load %arg11[%19, %c0_22] : memref<16x128xf32, #tpu.memory_space<vmem>>, vector<2x128xf32>
    %cst_23 = arith.constant dense<0.000000e+00> : vector<2x128xf32>
    %21 = tpu.matmul %16, %14, %cst_23 {dimension_numbers = #tpu.dot_dimension_numbers<[1], [0], [0], [1], [0, 0, 1, 1], [], []>} : vector<2x32xf32>, vector<32x128xf32>, vector<2x128xf32> -> vector<2x128xf32>
    %22 = arith.addf %20, %21 : vector<2x128xf32>
    %23 = arith.negf %22 : vector<2x128xf32>
    %24 = math.exp %23 : vector<2x128xf32>
    %cst_24 = arith.constant 1.000000e+00 : f32
    %25 = vector.broadcast %cst_24 : f32 to vector<2x128xf32>
    %26 = arith.addf %25, %24 : vector<2x128xf32>
    %27 = arith.divf %25, %26 : vector<2x128xf32>
    %28 = math.tanh %22 : vector<2x128xf32>
    %29 = vector.extract_strided_slice %27 {offsets = [0, 0], sizes = [2, 32], strides = [1, 1]} : vector<2x128xf32> to vector<2x32xf32>
    %30 = vector.extract_strided_slice %27 {offsets = [0, 32], sizes = [2, 32], strides = [1, 1]} : vector<2x128xf32> to vector<2x32xf32>
    %31 = vector.extract_strided_slice %28 {offsets = [0, 64], sizes = [2, 32], strides = [1, 1]} : vector<2x128xf32> to vector<2x32xf32>
    %32 = vector.extract_strided_slice %27 {offsets = [0, 96], sizes = [2, 32], strides = [1, 1]} : vector<2x128xf32> to vector<2x32xf32>
    %33 = arith.mulf %30, %17 : vector<2x32xf32>
    %34 = arith.mulf %29, %31 : vector<2x32xf32>
    %35 = arith.addf %33, %34 : vector<2x32xf32>
    %36 = math.tanh %35 : vector<2x32xf32>
    %37 = arith.mulf %32, %36 : vector<2x32xf32>
    %c1_i32 = arith.constant 1 : i32
    %c2_i32_25 = arith.constant 2 : i32
    %38 = arith.muli %c1_i32, %c2_i32_25 : i32
    %39 = arith.index_cast %38 : i32 to index
    %c0_26 = arith.constant 0 : index
    %40 = vector.load %arg11[%39, %c0_26] : memref<16x128xf32, #tpu.memory_space<vmem>>, vector<2x128xf32>
    %cst_27 = arith.constant dense<0.000000e+00> : vector<2x128xf32>
    %41 = tpu.matmul %37, %14, %cst_27 {dimension_numbers = #tpu.dot_dimension_numbers<[1], [0], [0], [1], [0, 0, 1, 1], [], []>} : vector<2x32xf32>, vector<32x128xf32>, vector<2x128xf32> -> vector<2x128xf32>
    %42 = arith.addf %40, %41 : vector<2x128xf32>
    %43 = arith.negf %42 : vector<2x128xf32>
    %44 = math.exp %43 : vector<2x128xf32>
    %cst_28 = arith.constant 1.000000e+00 : f32
    %45 = vector.broadcast %cst_28 : f32 to vector<2x128xf32>
    %46 = arith.addf %45, %44 : vector<2x128xf32>
    %47 = arith.divf %45, %46 : vector<2x128xf32>
    %48 = math.tanh %42 : vector<2x128xf32>
    %49 = vector.extract_strided_slice %47 {offsets = [0, 0], sizes = [2, 32], strides = [1, 1]} : vector<2x128xf32> to vector<2x32xf32>
    %50 = vector.extract_strided_slice %47 {offsets = [0, 32], sizes = [2, 32], strides = [1, 1]} : vector<2x128xf32> to vector<2x32xf32>
    %51 = vector.extract_strided_slice %48 {offsets = [0, 64], sizes = [2, 32], strides = [1, 1]} : vector<2x128xf32> to vector<2x32xf32>
    %52 = vector.extract_strided_slice %47 {offsets = [0, 96], sizes = [2, 32], strides = [1, 1]} : vector<2x128xf32> to vector<2x32xf32>
    %53 = arith.mulf %50, %35 : vector<2x32xf32>
    %54 = arith.mulf %49, %51 : vector<2x32xf32>
    %55 = arith.addf %53, %54 : vector<2x32xf32>
    %56 = math.tanh %55 : vector<2x32xf32>
    %57 = arith.mulf %52, %56 : vector<2x32xf32>
    %c2_i32_29 = arith.constant 2 : i32
    %c2_i32_30 = arith.constant 2 : i32
    %58 = arith.muli %c2_i32_29, %c2_i32_30 : i32
    %59 = arith.index_cast %58 : i32 to index
    %c0_31 = arith.constant 0 : index
    %60 = vector.load %arg11[%59, %c0_31] : memref<16x128xf32, #tpu.memory_space<vmem>>, vector<2x128xf32>
    %cst_32 = arith.constant dense<0.000000e+00> : vector<2x128xf32>
    %61 = tpu.matmul %57, %14, %cst_32 {dimension_numbers = #tpu.dot_dimension_numbers<[1], [0], [0], [1], [0, 0, 1, 1], [], []>} : vector<2x32xf32>, vector<32x128xf32>, vector<2x128xf32> -> vector<2x128xf32>
    %62 = arith.addf %60, %61 : vector<2x128xf32>
    %63 = arith.negf %62 : vector<2x128xf32>
    %64 = math.exp %63 : vector<2x128xf32>
    %cst_33 = arith.constant 1.000000e+00 : f32
    %65 = vector.broadcast %cst_33 : f32 to vector<2x128xf32>
    %66 = arith.addf %65, %64 : vector<2x128xf32>
    %67 = arith.divf %65, %66 : vector<2x128xf32>
    %68 = math.tanh %62 : vector<2x128xf32>
    %69 = vector.extract_strided_slice %67 {offsets = [0, 0], sizes = [2, 32], strides = [1, 1]} : vector<2x128xf32> to vector<2x32xf32>
    %70 = vector.extract_strided_slice %67 {offsets = [0, 32], sizes = [2, 32], strides = [1, 1]} : vector<2x128xf32> to vector<2x32xf32>
    %71 = vector.extract_strided_slice %68 {offsets = [0, 64], sizes = [2, 32], strides = [1, 1]} : vector<2x128xf32> to vector<2x32xf32>
    %72 = vector.extract_strided_slice %67 {offsets = [0, 96], sizes = [2, 32], strides = [1, 1]} : vector<2x128xf32> to vector<2x32xf32>
    %73 = arith.mulf %70, %55 : vector<2x32xf32>
    %74 = arith.mulf %69, %71 : vector<2x32xf32>
    %75 = arith.addf %73, %74 : vector<2x32xf32>
    %76 = math.tanh %75 : vector<2x32xf32>
    %77 = arith.mulf %72, %76 : vector<2x32xf32>
    %c3_i32 = arith.constant 3 : i32
    %c2_i32_34 = arith.constant 2 : i32
    %78 = arith.muli %c3_i32, %c2_i32_34 : i32
    %79 = arith.index_cast %78 : i32 to index
    %c0_35 = arith.constant 0 : index
    %80 = vector.load %arg11[%79, %c0_35] : memref<16x128xf32, #tpu.memory_space<vmem>>, vector<2x128xf32>
    %cst_36 = arith.constant dense<0.000000e+00> : vector<2x128xf32>
    %81 = tpu.matmul %77, %14, %cst_36 {dimension_numbers = #tpu.dot_dimension_numbers<[1], [0], [0], [1], [0, 0, 1, 1], [], []>} : vector<2x32xf32>, vector<32x128xf32>, vector<2x128xf32> -> vector<2x128xf32>
    %82 = arith.addf %80, %81 : vector<2x128xf32>
    %83 = arith.negf %82 : vector<2x128xf32>
    %84 = math.exp %83 : vector<2x128xf32>
    %cst_37 = arith.constant 1.000000e+00 : f32
    %85 = vector.broadcast %cst_37 : f32 to vector<2x128xf32>
    %86 = arith.addf %85, %84 : vector<2x128xf32>
    %87 = arith.divf %85, %86 : vector<2x128xf32>
    %88 = math.tanh %82 : vector<2x128xf32>
    %89 = vector.extract_strided_slice %87 {offsets = [0, 0], sizes = [2, 32], strides = [1, 1]} : vector<2x128xf32> to vector<2x32xf32>
    %90 = vector.extract_strided_slice %87 {offsets = [0, 32], sizes = [2, 32], strides = [1, 1]} : vector<2x128xf32> to vector<2x32xf32>
    %91 = vector.extract_strided_slice %88 {offsets = [0, 64], sizes = [2, 32], strides = [1, 1]} : vector<2x128xf32> to vector<2x32xf32>
    %92 = vector.extract_strided_slice %87 {offsets = [0, 96], sizes = [2, 32], strides = [1, 1]} : vector<2x128xf32> to vector<2x32xf32>
    %93 = arith.mulf %90, %75 : vector<2x32xf32>
    %94 = arith.mulf %89, %91 : vector<2x32xf32>
    %95 = arith.addf %93, %94 : vector<2x32xf32>
    %96 = math.tanh %95 : vector<2x32xf32>
    %97 = arith.mulf %92, %96 : vector<2x32xf32>
    %c4_i32 = arith.constant 4 : i32
    %c2_i32_38 = arith.constant 2 : i32
    %98 = arith.muli %c4_i32, %c2_i32_38 : i32
    %99 = arith.index_cast %98 : i32 to index
    %c0_39 = arith.constant 0 : index
    %100 = vector.load %arg11[%99, %c0_39] : memref<16x128xf32, #tpu.memory_space<vmem>>, vector<2x128xf32>
    %cst_40 = arith.constant dense<0.000000e+00> : vector<2x128xf32>
    %101 = tpu.matmul %97, %14, %cst_40 {dimension_numbers = #tpu.dot_dimension_numbers<[1], [0], [0], [1], [0, 0, 1, 1], [], []>} : vector<2x32xf32>, vector<32x128xf32>, vector<2x128xf32> -> vector<2x128xf32>
    %102 = arith.addf %100, %101 : vector<2x128xf32>
    %103 = arith.negf %102 : vector<2x128xf32>
    %104 = math.exp %103 : vector<2x128xf32>
    %cst_41 = arith.constant 1.000000e+00 : f32
    %105 = vector.broadcast %cst_41 : f32 to vector<2x128xf32>
    %106 = arith.addf %105, %104 : vector<2x128xf32>
    %107 = arith.divf %105, %106 : vector<2x128xf32>
    %108 = math.tanh %102 : vector<2x128xf32>
    %109 = vector.extract_strided_slice %107 {offsets = [0, 0], sizes = [2, 32], strides = [1, 1]} : vector<2x128xf32> to vector<2x32xf32>
    %110 = vector.extract_strided_slice %107 {offsets = [0, 32], sizes = [2, 32], strides = [1, 1]} : vector<2x128xf32> to vector<2x32xf32>
    %111 = vector.extract_strided_slice %108 {offsets = [0, 64], sizes = [2, 32], strides = [1, 1]} : vector<2x128xf32> to vector<2x32xf32>
    %112 = vector.extract_strided_slice %107 {offsets = [0, 96], sizes = [2, 32], strides = [1, 1]} : vector<2x128xf32> to vector<2x32xf32>
    %113 = arith.mulf %110, %95 : vector<2x32xf32>
    %114 = arith.mulf %109, %111 : vector<2x32xf32>
    %115 = arith.addf %113, %114 : vector<2x32xf32>
    %116 = math.tanh %115 : vector<2x32xf32>
    %117 = arith.mulf %112, %116 : vector<2x32xf32>
    %c5_i32 = arith.constant 5 : i32
    %c2_i32_42 = arith.constant 2 : i32
    %118 = arith.muli %c5_i32, %c2_i32_42 : i32
    %119 = arith.index_cast %118 : i32 to index
    %c0_43 = arith.constant 0 : index
    %120 = vector.load %arg11[%119, %c0_43] : memref<16x128xf32, #tpu.memory_space<vmem>>, vector<2x128xf32>
    %cst_44 = arith.constant dense<0.000000e+00> : vector<2x128xf32>
    %121 = tpu.matmul %117, %14, %cst_44 {dimension_numbers = #tpu.dot_dimension_numbers<[1], [0], [0], [1], [0, 0, 1, 1], [], []>} : vector<2x32xf32>, vector<32x128xf32>, vector<2x128xf32> -> vector<2x128xf32>
    %122 = arith.addf %120, %121 : vector<2x128xf32>
    %123 = arith.negf %122 : vector<2x128xf32>
    %124 = math.exp %123 : vector<2x128xf32>
    %cst_45 = arith.constant 1.000000e+00 : f32
    %125 = vector.broadcast %cst_45 : f32 to vector<2x128xf32>
    %126 = arith.addf %125, %124 : vector<2x128xf32>
    %127 = arith.divf %125, %126 : vector<2x128xf32>
    %128 = math.tanh %122 : vector<2x128xf32>
    %129 = vector.extract_strided_slice %127 {offsets = [0, 0], sizes = [2, 32], strides = [1, 1]} : vector<2x128xf32> to vector<2x32xf32>
    %130 = vector.extract_strided_slice %127 {offsets = [0, 32], sizes = [2, 32], strides = [1, 1]} : vector<2x128xf32> to vector<2x32xf32>
    %131 = vector.extract_strided_slice %128 {offsets = [0, 64], sizes = [2, 32], strides = [1, 1]} : vector<2x128xf32> to vector<2x32xf32>
    %132 = vector.extract_strided_slice %127 {offsets = [0, 96], sizes = [2, 32], strides = [1, 1]} : vector<2x128xf32> to vector<2x32xf32>
    %133 = arith.mulf %130, %115 : vector<2x32xf32>
    %134 = arith.mulf %129, %131 : vector<2x32xf32>
    %135 = arith.addf %133, %134 : vector<2x32xf32>
    %136 = math.tanh %135 : vector<2x32xf32>
    %137 = arith.mulf %132, %136 : vector<2x32xf32>
    %c6_i32 = arith.constant 6 : i32
    %c2_i32_46 = arith.constant 2 : i32
    %138 = arith.muli %c6_i32, %c2_i32_46 : i32
    %139 = arith.index_cast %138 : i32 to index
    %c0_47 = arith.constant 0 : index
    %140 = vector.load %arg11[%139, %c0_47] : memref<16x128xf32, #tpu.memory_space<vmem>>, vector<2x128xf32>
    %cst_48 = arith.constant dense<0.000000e+00> : vector<2x128xf32>
    %141 = tpu.matmul %137, %14, %cst_48 {dimension_numbers = #tpu.dot_dimension_numbers<[1], [0], [0], [1], [0, 0, 1, 1], [], []>} : vector<2x32xf32>, vector<32x128xf32>, vector<2x128xf32> -> vector<2x128xf32>
    %142 = arith.addf %140, %141 : vector<2x128xf32>
    %143 = arith.negf %142 : vector<2x128xf32>
    %144 = math.exp %143 : vector<2x128xf32>
    %cst_49 = arith.constant 1.000000e+00 : f32
    %145 = vector.broadcast %cst_49 : f32 to vector<2x128xf32>
    %146 = arith.addf %145, %144 : vector<2x128xf32>
    %147 = arith.divf %145, %146 : vector<2x128xf32>
    %148 = math.tanh %142 : vector<2x128xf32>
    %149 = vector.extract_strided_slice %147 {offsets = [0, 0], sizes = [2, 32], strides = [1, 1]} : vector<2x128xf32> to vector<2x32xf32>
    %150 = vector.extract_strided_slice %147 {offsets = [0, 32], sizes = [2, 32], strides = [1, 1]} : vector<2x128xf32> to vector<2x32xf32>
    %151 = vector.extract_strided_slice %148 {offsets = [0, 64], sizes = [2, 32], strides = [1, 1]} : vector<2x128xf32> to vector<2x32xf32>
    %152 = vector.extract_strided_slice %147 {offsets = [0, 96], sizes = [2, 32], strides = [1, 1]} : vector<2x128xf32> to vector<2x32xf32>
    %153 = arith.mulf %150, %135 : vector<2x32xf32>
    %154 = arith.mulf %149, %151 : vector<2x32xf32>
    %155 = arith.addf %153, %154 : vector<2x32xf32>
    %156 = math.tanh %155 : vector<2x32xf32>
    %157 = arith.mulf %152, %156 : vector<2x32xf32>
    %c7_i32 = arith.constant 7 : i32
    %c2_i32_50 = arith.constant 2 : i32
    %158 = arith.muli %c7_i32, %c2_i32_50 : i32
    %159 = arith.index_cast %158 : i32 to index
    %c0_51 = arith.constant 0 : index
    %160 = vector.load %arg11[%159, %c0_51] : memref<16x128xf32, #tpu.memory_space<vmem>>, vector<2x128xf32>
    %cst_52 = arith.constant dense<0.000000e+00> : vector<2x128xf32>
    %161 = tpu.matmul %157, %14, %cst_52 {dimension_numbers = #tpu.dot_dimension_numbers<[1], [0], [0], [1], [0, 0, 1, 1], [], []>} : vector<2x32xf32>, vector<32x128xf32>, vector<2x128xf32> -> vector<2x128xf32>
    %162 = arith.addf %160, %161 : vector<2x128xf32>
    %163 = arith.negf %162 : vector<2x128xf32>
    %164 = math.exp %163 : vector<2x128xf32>
    %cst_53 = arith.constant 1.000000e+00 : f32
    %165 = vector.broadcast %cst_53 : f32 to vector<2x128xf32>
    %166 = arith.addf %165, %164 : vector<2x128xf32>
    %167 = arith.divf %165, %166 : vector<2x128xf32>
    %168 = math.tanh %162 : vector<2x128xf32>
    %169 = vector.extract_strided_slice %167 {offsets = [0, 0], sizes = [2, 32], strides = [1, 1]} : vector<2x128xf32> to vector<2x32xf32>
    %170 = vector.extract_strided_slice %167 {offsets = [0, 32], sizes = [2, 32], strides = [1, 1]} : vector<2x128xf32> to vector<2x32xf32>
    %171 = vector.extract_strided_slice %168 {offsets = [0, 64], sizes = [2, 32], strides = [1, 1]} : vector<2x128xf32> to vector<2x32xf32>
    %172 = vector.extract_strided_slice %167 {offsets = [0, 96], sizes = [2, 32], strides = [1, 1]} : vector<2x128xf32> to vector<2x32xf32>
    %173 = arith.mulf %170, %155 : vector<2x32xf32>
    %174 = arith.mulf %169, %171 : vector<2x32xf32>
    %175 = arith.addf %173, %174 : vector<2x32xf32>
    %176 = math.tanh %175 : vector<2x32xf32>
    %177 = arith.mulf %172, %176 : vector<2x32xf32>
    %c8_i32 = arith.constant 8 : i32
    %c0_i32_54 = arith.constant 0 : i32
    %c2_i32_55 = arith.constant 2 : i32
    %178 = arith.muli %c0_i32_54, %c2_i32_55 : i32
    %179 = arith.index_cast %178 : i32 to index
    %c0_56 = arith.constant 0 : index
    %180 = vector.load %arg12[%179, %c0_56] : memref<16x128xf32, #tpu.memory_space<vmem>>, vector<2x128xf32>
    %cst_57 = arith.constant dense<0.000000e+00> : vector<2x128xf32>
    %181 = tpu.matmul %177, %15, %cst_57 {dimension_numbers = #tpu.dot_dimension_numbers<[1], [0], [0], [1], [0, 0, 1, 1], [], []>} : vector<2x32xf32>, vector<32x128xf32>, vector<2x128xf32> -> vector<2x128xf32>
    %182 = arith.addf %180, %181 : vector<2x128xf32>
    %183 = arith.negf %182 : vector<2x128xf32>
    %184 = math.exp %183 : vector<2x128xf32>
    %cst_58 = arith.constant 1.000000e+00 : f32
    %185 = vector.broadcast %cst_58 : f32 to vector<2x128xf32>
    %186 = arith.addf %185, %184 : vector<2x128xf32>
    %187 = arith.divf %185, %186 : vector<2x128xf32>
    %188 = math.tanh %182 : vector<2x128xf32>
    %189 = vector.extract_strided_slice %187 {offsets = [0, 0], sizes = [2, 32], strides = [1, 1]} : vector<2x128xf32> to vector<2x32xf32>
    %190 = vector.extract_strided_slice %187 {offsets = [0, 32], sizes = [2, 32], strides = [1, 1]} : vector<2x128xf32> to vector<2x32xf32>
    %191 = vector.extract_strided_slice %188 {offsets = [0, 64], sizes = [2, 32], strides = [1, 1]} : vector<2x128xf32> to vector<2x32xf32>
    %192 = vector.extract_strided_slice %187 {offsets = [0, 96], sizes = [2, 32], strides = [1, 1]} : vector<2x128xf32> to vector<2x32xf32>
    %193 = arith.mulf %190, %175 : vector<2x32xf32>
    %194 = arith.mulf %189, %191 : vector<2x32xf32>
    %195 = arith.addf %193, %194 : vector<2x32xf32>
    %196 = math.tanh %195 : vector<2x32xf32>
    %197 = arith.mulf %192, %196 : vector<2x32xf32>
    %c2_i32_59 = arith.constant 2 : i32
    %198 = arith.muli %c0_i32_54, %c2_i32_59 : i32
    %199 = arith.index_cast %198 : i32 to index
    %c0_60 = arith.constant 0 : index
    %200 = vector.load %arg13[%199, %c0_60] : memref<16x32xf32, #tpu.memory_space<vmem>>, vector<2x32xf32>
    tpu.vector_store %arg13[%199, %c0_60], %197 {strides = array<i32>} : memref<16x32xf32, #tpu.memory_space<vmem>>, vector<2x32xf32>,
    %c1_i32_61 = arith.constant 1 : i32
    %c2_i32_62 = arith.constant 2 : i32
    %201 = arith.muli %c1_i32_61, %c2_i32_62 : i32
    %202 = arith.index_cast %201 : i32 to index
    %c0_63 = arith.constant 0 : index
    %203 = vector.load %arg12[%202, %c0_63] : memref<16x128xf32, #tpu.memory_space<vmem>>, vector<2x128xf32>
    %cst_64 = arith.constant dense<0.000000e+00> : vector<2x128xf32>
    %204 = tpu.matmul %197, %15, %cst_64 {dimension_numbers = #tpu.dot_dimension_numbers<[1], [0], [0], [1], [0, 0, 1, 1], [], []>} : vector<2x32xf32>, vector<32x128xf32>, vector<2x128xf32> -> vector<2x128xf32>
    %205 = arith.addf %203, %204 : vector<2x128xf32>
    %206 = arith.negf %205 : vector<2x128xf32>
    %207 = math.exp %206 : vector<2x128xf32>
    %cst_65 = arith.constant 1.000000e+00 : f32
    %208 = vector.broadcast %cst_65 : f32 to vector<2x128xf32>
    %209 = arith.addf %208, %207 : vector<2x128xf32>
    %210 = arith.divf %208, %209 : vector<2x128xf32>
    %211 = math.tanh %205 : vector<2x128xf32>
    %212 = vector.extract_strided_slice %210 {offsets = [0, 0], sizes = [2, 32], strides = [1, 1]} : vector<2x128xf32> to vector<2x32xf32>
    %213 = vector.extract_strided_slice %210 {offsets = [0, 32], sizes = [2, 32], strides = [1, 1]} : vector<2x128xf32> to vector<2x32xf32>
    %214 = vector.extract_strided_slice %211 {offsets = [0, 64], sizes = [2, 32], strides = [1, 1]} : vector<2x128xf32> to vector<2x32xf32>
    %215 = vector.extract_strided_slice %210 {offsets = [0, 96], sizes = [2, 32], strides = [1, 1]} : vector<2x128xf32> to vector<2x32xf32>
    %216 = arith.mulf %213, %195 : vector<2x32xf32>
    %217 = arith.mulf %212, %214 : vector<2x32xf32>
    %218 = arith.addf %216, %217 : vector<2x32xf32>
    %219 = math.tanh %218 : vector<2x32xf32>
    %220 = arith.mulf %215, %219 : vector<2x32xf32>
    %c2_i32_66 = arith.constant 2 : i32
    %221 = arith.muli %c1_i32_61, %c2_i32_66 : i32
    %222 = arith.index_cast %221 : i32 to index
    %c0_67 = arith.constant 0 : index
    %223 = vector.load %arg13[%222, %c0_67] : memref<16x32xf32, #tpu.memory_space<vmem>>, vector<2x32xf32>
    tpu.vector_store %arg13[%222, %c0_67], %220 {strides = array<i32>} : memref<16x32xf32, #tpu.memory_space<vmem>>, vector<2x32xf32>,
    %c2_i32_68 = arith.constant 2 : i32
    %c2_i32_69 = arith.constant 2 : i32
    %224 = arith.muli %c2_i32_68, %c2_i32_69 : i32
    %225 = arith.index_cast %224 : i32 to index
    %c0_70 = arith.constant 0 : index
    %226 = vector.load %arg12[%225, %c0_70] : memref<16x128xf32, #tpu.memory_space<vmem>>, vector<2x128xf32>
    %cst_71 = arith.constant dense<0.000000e+00> : vector<2x128xf32>
    %227 = tpu.matmul %220, %15, %cst_71 {dimension_numbers = #tpu.dot_dimension_numbers<[1], [0], [0], [1], [0, 0, 1, 1], [], []>} : vector<2x32xf32>, vector<32x128xf32>, vector<2x128xf32> -> vector<2x128xf32>
    %228 = arith.addf %226, %227 : vector<2x128xf32>
    %229 = arith.negf %228 : vector<2x128xf32>
    %230 = math.exp %229 : vector<2x128xf32>
    %cst_72 = arith.constant 1.000000e+00 : f32
    %231 = vector.broadcast %cst_72 : f32 to vector<2x128xf32>
    %232 = arith.addf %231, %230 : vector<2x128xf32>
    %233 = arith.divf %231, %232 : vector<2x128xf32>
    %234 = math.tanh %228 : vector<2x128xf32>
    %235 = vector.extract_strided_slice %233 {offsets = [0, 0], sizes = [2, 32], strides = [1, 1]} : vector<2x128xf32> to vector<2x32xf32>
    %236 = vector.extract_strided_slice %233 {offsets = [0, 32], sizes = [2, 32], strides = [1, 1]} : vector<2x128xf32> to vector<2x32xf32>
    %237 = vector.extract_strided_slice %234 {offsets = [0, 64], sizes = [2, 32], strides = [1, 1]} : vector<2x128xf32> to vector<2x32xf32>
    %238 = vector.extract_strided_slice %233 {offsets = [0, 96], sizes = [2, 32], strides = [1, 1]} : vector<2x128xf32> to vector<2x32xf32>
    %239 = arith.mulf %236, %218 : vector<2x32xf32>
    %240 = arith.mulf %235, %237 : vector<2x32xf32>
    %241 = arith.addf %239, %240 : vector<2x32xf32>
    %242 = math.tanh %241 : vector<2x32xf32>
    %243 = arith.mulf %238, %242 : vector<2x32xf32>
    %c2_i32_73 = arith.constant 2 : i32
    %244 = arith.muli %c2_i32_68, %c2_i32_73 : i32
    %245 = arith.index_cast %244 : i32 to index
    %c0_74 = arith.constant 0 : index
    %246 = vector.load %arg13[%245, %c0_74] : memref<16x32xf32, #tpu.memory_space<vmem>>, vector<2x32xf32>
    tpu.vector_store %arg13[%245, %c0_74], %243 {strides = array<i32>} : memref<16x32xf32, #tpu.memory_space<vmem>>, vector<2x32xf32>,
    %c3_i32_75 = arith.constant 3 : i32
    %c2_i32_76 = arith.constant 2 : i32
    %247 = arith.muli %c3_i32_75, %c2_i32_76 : i32
    %248 = arith.index_cast %247 : i32 to index
    %c0_77 = arith.constant 0 : index
    %249 = vector.load %arg12[%248, %c0_77] : memref<16x128xf32, #tpu.memory_space<vmem>>, vector<2x128xf32>
    %cst_78 = arith.constant dense<0.000000e+00> : vector<2x128xf32>
    %250 = tpu.matmul %243, %15, %cst_78 {dimension_numbers = #tpu.dot_dimension_numbers<[1], [0], [0], [1], [0, 0, 1, 1], [], []>} : vector<2x32xf32>, vector<32x128xf32>, vector<2x128xf32> -> vector<2x128xf32>
    %251 = arith.addf %249, %250 : vector<2x128xf32>
    %252 = arith.negf %251 : vector<2x128xf32>
    %253 = math.exp %252 : vector<2x128xf32>
    %cst_79 = arith.constant 1.000000e+00 : f32
    %254 = vector.broadcast %cst_79 : f32 to vector<2x128xf32>
    %255 = arith.addf %254, %253 : vector<2x128xf32>
    %256 = arith.divf %254, %255 : vector<2x128xf32>
    %257 = math.tanh %251 : vector<2x128xf32>
    %258 = vector.extract_strided_slice %256 {offsets = [0, 0], sizes = [2, 32], strides = [1, 1]} : vector<2x128xf32> to vector<2x32xf32>
    %259 = vector.extract_strided_slice %256 {offsets = [0, 32], sizes = [2, 32], strides = [1, 1]} : vector<2x128xf32> to vector<2x32xf32>
    %260 = vector.extract_strided_slice %257 {offsets = [0, 64], sizes = [2, 32], strides = [1, 1]} : vector<2x128xf32> to vector<2x32xf32>
    %261 = vector.extract_strided_slice %256 {offsets = [0, 96], sizes = [2, 32], strides = [1, 1]} : vector<2x128xf32> to vector<2x32xf32>
    %262 = arith.mulf %259, %241 : vector<2x32xf32>
    %263 = arith.mulf %258, %260 : vector<2x32xf32>
    %264 = arith.addf %262, %263 : vector<2x32xf32>
    %265 = math.tanh %264 : vector<2x32xf32>
    %266 = arith.mulf %261, %265 : vector<2x32xf32>
    %c2_i32_80 = arith.constant 2 : i32
    %267 = arith.muli %c3_i32_75, %c2_i32_80 : i32
    %268 = arith.index_cast %267 : i32 to index
    %c0_81 = arith.constant 0 : index
    %269 = vector.load %arg13[%268, %c0_81] : memref<16x32xf32, #tpu.memory_space<vmem>>, vector<2x32xf32>
    tpu.vector_store %arg13[%268, %c0_81], %266 {strides = array<i32>} : memref<16x32xf32, #tpu.memory_space<vmem>>, vector<2x32xf32>,
    %c4_i32_82 = arith.constant 4 : i32
    %c2_i32_83 = arith.constant 2 : i32
    %270 = arith.muli %c4_i32_82, %c2_i32_83 : i32
    %271 = arith.index_cast %270 : i32 to index
    %c0_84 = arith.constant 0 : index
    %272 = vector.load %arg12[%271, %c0_84] : memref<16x128xf32, #tpu.memory_space<vmem>>, vector<2x128xf32>
    %cst_85 = arith.constant dense<0.000000e+00> : vector<2x128xf32>
    %273 = tpu.matmul %266, %15, %cst_85 {dimension_numbers = #tpu.dot_dimension_numbers<[1], [0], [0], [1], [0, 0, 1, 1], [], []>} : vector<2x32xf32>, vector<32x128xf32>, vector<2x128xf32> -> vector<2x128xf32>
    %274 = arith.addf %272, %273 : vector<2x128xf32>
    %275 = arith.negf %274 : vector<2x128xf32>
    %276 = math.exp %275 : vector<2x128xf32>
    %cst_86 = arith.constant 1.000000e+00 : f32
    %277 = vector.broadcast %cst_86 : f32 to vector<2x128xf32>
    %278 = arith.addf %277, %276 : vector<2x128xf32>
    %279 = arith.divf %277, %278 : vector<2x128xf32>
    %280 = math.tanh %274 : vector<2x128xf32>
    %281 = vector.extract_strided_slice %279 {offsets = [0, 0], sizes = [2, 32], strides = [1, 1]} : vector<2x128xf32> to vector<2x32xf32>
    %282 = vector.extract_strided_slice %279 {offsets = [0, 32], sizes = [2, 32], strides = [1, 1]} : vector<2x128xf32> to vector<2x32xf32>
    %283 = vector.extract_strided_slice %280 {offsets = [0, 64], sizes = [2, 32], strides = [1, 1]} : vector<2x128xf32> to vector<2x32xf32>
    %284 = vector.extract_strided_slice %279 {offsets = [0, 96], sizes = [2, 32], strides = [1, 1]} : vector<2x128xf32> to vector<2x32xf32>
    %285 = arith.mulf %282, %264 : vector<2x32xf32>
    %286 = arith.mulf %281, %283 : vector<2x32xf32>
    %287 = arith.addf %285, %286 : vector<2x32xf32>
    %288 = math.tanh %287 : vector<2x32xf32>
    %289 = arith.mulf %284, %288 : vector<2x32xf32>
    %c2_i32_87 = arith.constant 2 : i32
    %290 = arith.muli %c4_i32_82, %c2_i32_87 : i32
    %291 = arith.index_cast %290 : i32 to index
    %c0_88 = arith.constant 0 : index
    %292 = vector.load %arg13[%291, %c0_88] : memref<16x32xf32, #tpu.memory_space<vmem>>, vector<2x32xf32>
    tpu.vector_store %arg13[%291, %c0_88], %289 {strides = array<i32>} : memref<16x32xf32, #tpu.memory_space<vmem>>, vector<2x32xf32>,
    %c5_i32_89 = arith.constant 5 : i32
    %c2_i32_90 = arith.constant 2 : i32
    %293 = arith.muli %c5_i32_89, %c2_i32_90 : i32
    %294 = arith.index_cast %293 : i32 to index
    %c0_91 = arith.constant 0 : index
    %295 = vector.load %arg12[%294, %c0_91] : memref<16x128xf32, #tpu.memory_space<vmem>>, vector<2x128xf32>
    %cst_92 = arith.constant dense<0.000000e+00> : vector<2x128xf32>
    %296 = tpu.matmul %289, %15, %cst_92 {dimension_numbers = #tpu.dot_dimension_numbers<[1], [0], [0], [1], [0, 0, 1, 1], [], []>} : vector<2x32xf32>, vector<32x128xf32>, vector<2x128xf32> -> vector<2x128xf32>
    %297 = arith.addf %295, %296 : vector<2x128xf32>
    %298 = arith.negf %297 : vector<2x128xf32>
    %299 = math.exp %298 : vector<2x128xf32>
    %cst_93 = arith.constant 1.000000e+00 : f32
    %300 = vector.broadcast %cst_93 : f32 to vector<2x128xf32>
    %301 = arith.addf %300, %299 : vector<2x128xf32>
    %302 = arith.divf %300, %301 : vector<2x128xf32>
    %303 = math.tanh %297 : vector<2x128xf32>
    %304 = vector.extract_strided_slice %302 {offsets = [0, 0], sizes = [2, 32], strides = [1, 1]} : vector<2x128xf32> to vector<2x32xf32>
    %305 = vector.extract_strided_slice %302 {offsets = [0, 32], sizes = [2, 32], strides = [1, 1]} : vector<2x128xf32> to vector<2x32xf32>
    %306 = vector.extract_strided_slice %303 {offsets = [0, 64], sizes = [2, 32], strides = [1, 1]} : vector<2x128xf32> to vector<2x32xf32>
    %307 = vector.extract_strided_slice %302 {offsets = [0, 96], sizes = [2, 32], strides = [1, 1]} : vector<2x128xf32> to vector<2x32xf32>
    %308 = arith.mulf %305, %287 : vector<2x32xf32>
    %309 = arith.mulf %304, %306 : vector<2x32xf32>
    %310 = arith.addf %308, %309 : vector<2x32xf32>
    %311 = math.tanh %310 : vector<2x32xf32>
    %312 = arith.mulf %307, %311 : vector<2x32xf32>
    %c2_i32_94 = arith.constant 2 : i32
    %313 = arith.muli %c5_i32_89, %c2_i32_94 : i32
    %314 = arith.index_cast %313 : i32 to index
    %c0_95 = arith.constant 0 : index
    %315 = vector.load %arg13[%314, %c0_95] : memref<16x32xf32, #tpu.memory_space<vmem>>, vector<2x32xf32>
    tpu.vector_store %arg13[%314, %c0_95], %312 {strides = array<i32>} : memref<16x32xf32, #tpu.memory_space<vmem>>, vector<2x32xf32>,
    %c6_i32_96 = arith.constant 6 : i32
    %c2_i32_97 = arith.constant 2 : i32
    %316 = arith.muli %c6_i32_96, %c2_i32_97 : i32
    %317 = arith.index_cast %316 : i32 to index
    %c0_98 = arith.constant 0 : index
    %318 = vector.load %arg12[%317, %c0_98] : memref<16x128xf32, #tpu.memory_space<vmem>>, vector<2x128xf32>
    %cst_99 = arith.constant dense<0.000000e+00> : vector<2x128xf32>
    %319 = tpu.matmul %312, %15, %cst_99 {dimension_numbers = #tpu.dot_dimension_numbers<[1], [0], [0], [1], [0, 0, 1, 1], [], []>} : vector<2x32xf32>, vector<32x128xf32>, vector<2x128xf32> -> vector<2x128xf32>
    %320 = arith.addf %318, %319 : vector<2x128xf32>
    %321 = arith.negf %320 : vector<2x128xf32>
    %322 = math.exp %321 : vector<2x128xf32>
    %cst_100 = arith.constant 1.000000e+00 : f32
    %323 = vector.broadcast %cst_100 : f32 to vector<2x128xf32>
    %324 = arith.addf %323, %322 : vector<2x128xf32>
    %325 = arith.divf %323, %324 : vector<2x128xf32>
    %326 = math.tanh %320 : vector<2x128xf32>
    %327 = vector.extract_strided_slice %325 {offsets = [0, 0], sizes = [2, 32], strides = [1, 1]} : vector<2x128xf32> to vector<2x32xf32>
    %328 = vector.extract_strided_slice %325 {offsets = [0, 32], sizes = [2, 32], strides = [1, 1]} : vector<2x128xf32> to vector<2x32xf32>
    %329 = vector.extract_strided_slice %326 {offsets = [0, 64], sizes = [2, 32], strides = [1, 1]} : vector<2x128xf32> to vector<2x32xf32>
    %330 = vector.extract_strided_slice %325 {offsets = [0, 96], sizes = [2, 32], strides = [1, 1]} : vector<2x128xf32> to vector<2x32xf32>
    %331 = arith.mulf %328, %310 : vector<2x32xf32>
    %332 = arith.mulf %327, %329 : vector<2x32xf32>
    %333 = arith.addf %331, %332 : vector<2x32xf32>
    %334 = math.tanh %333 : vector<2x32xf32>
    %335 = arith.mulf %330, %334 : vector<2x32xf32>
    %c2_i32_101 = arith.constant 2 : i32
    %336 = arith.muli %c6_i32_96, %c2_i32_101 : i32
    %337 = arith.index_cast %336 : i32 to index
    %c0_102 = arith.constant 0 : index
    %338 = vector.load %arg13[%337, %c0_102] : memref<16x32xf32, #tpu.memory_space<vmem>>, vector<2x32xf32>
    tpu.vector_store %arg13[%337, %c0_102], %335 {strides = array<i32>} : memref<16x32xf32, #tpu.memory_space<vmem>>, vector<2x32xf32>,
    %c7_i32_103 = arith.constant 7 : i32
    %c2_i32_104 = arith.constant 2 : i32
    %339 = arith.muli %c7_i32_103, %c2_i32_104 : i32
    %340 = arith.index_cast %339 : i32 to index
    %c0_105 = arith.constant 0 : index
    %341 = vector.load %arg12[%340, %c0_105] : memref<16x128xf32, #tpu.memory_space<vmem>>, vector<2x128xf32>
    %cst_106 = arith.constant dense<0.000000e+00> : vector<2x128xf32>
    %342 = tpu.matmul %335, %15, %cst_106 {dimension_numbers = #tpu.dot_dimension_numbers<[1], [0], [0], [1], [0, 0, 1, 1], [], []>} : vector<2x32xf32>, vector<32x128xf32>, vector<2x128xf32> -> vector<2x128xf32>
    %343 = arith.addf %341, %342 : vector<2x128xf32>
    %344 = arith.negf %343 : vector<2x128xf32>
    %345 = math.exp %344 : vector<2x128xf32>
    %cst_107 = arith.constant 1.000000e+00 : f32
    %346 = vector.broadcast %cst_107 : f32 to vector<2x128xf32>
    %347 = arith.addf %346, %345 : vector<2x128xf32>
    %348 = arith.divf %346, %347 : vector<2x128xf32>
    %349 = math.tanh %343 : vector<2x128xf32>
    %350 = vector.extract_strided_slice %348 {offsets = [0, 0], sizes = [2, 32], strides = [1, 1]} : vector<2x128xf32> to vector<2x32xf32>
    %351 = vector.extract_strided_slice %348 {offsets = [0, 32], sizes = [2, 32], strides = [1, 1]} : vector<2x128xf32> to vector<2x32xf32>
    %352 = vector.extract_strided_slice %349 {offsets = [0, 64], sizes = [2, 32], strides = [1, 1]} : vector<2x128xf32> to vector<2x32xf32>
    %353 = vector.extract_strided_slice %348 {offsets = [0, 96], sizes = [2, 32], strides = [1, 1]} : vector<2x128xf32> to vector<2x32xf32>
    %354 = arith.mulf %351, %333 : vector<2x32xf32>
    %355 = arith.mulf %350, %352 : vector<2x32xf32>
    %356 = arith.addf %354, %355 : vector<2x32xf32>
    %357 = math.tanh %356 : vector<2x32xf32>
    %358 = arith.mulf %353, %357 : vector<2x32xf32>
    %c2_i32_108 = arith.constant 2 : i32
    %359 = arith.muli %c7_i32_103, %c2_i32_108 : i32
    %360 = arith.index_cast %359 : i32 to index
    %c0_109 = arith.constant 0 : index
    %361 = vector.load %arg13[%360, %c0_109] : memref<16x32xf32, #tpu.memory_space<vmem>>, vector<2x32xf32>
    tpu.vector_store %arg13[%360, %c0_109], %358 {strides = array<i32>} : memref<16x32xf32, #tpu.memory_space<vmem>>, vector<2x32xf32>,
    %c8_i32_110 = arith.constant 8 : i32
    %c0_111 = arith.constant 0 : index
    %c0_112 = arith.constant 0 : index
    %362 = vector.load %arg13[%c0_111, %c0_112] : memref<16x32xf32, #tpu.memory_space<vmem>>, vector<16x32xf32>
    %c0_113 = arith.constant 0 : index
    %c0_114 = arith.constant 0 : index
    %363 = vector.load %arg8[%c0_113, %c0_114] : memref<32x128xf32, #tpu.memory_space<vmem>>, vector<32x128xf32>
    %cst_115 = arith.constant dense<0.000000e+00> : vector<16x128xf32>
    %364 = tpu.matmul %362, %363, %cst_115 {dimension_numbers = #tpu.dot_dimension_numbers<[1], [0], [0], [1], [0, 0, 1, 1], [], []>} : vector<16x32xf32>, vector<32x128xf32>, vector<16x128xf32> -> vector<16x128xf32>
    %c0_116 = arith.constant 0 : index
    %c0_117 = arith.constant 0 : index
    %365 = vector.load %arg9[%c0_116, %c0_117] : memref<1x128xf32, #tpu.memory_space<vmem>>, vector<1x128xf32>
    %366 = vector.broadcast %365 : vector<1x128xf32> to vector<16x128xf32>
    %367 = arith.addf %364, %366 : vector<16x128xf32>
    %c0_118 = arith.constant 0 : index
    %c0_119 = arith.constant 0 : index
    %368 = vector.load %arg10[%c0_118, %c0_119] : memref<16x128xf32, #tpu.memory_space<vmem>>, vector<16x128xf32>
    tpu.vector_store %arg10[%c0_118, %c0_119], %367 {strides = array<i32>} : memref<16x128xf32, #tpu.memory_space<vmem>>, vector<16x128xf32>,
    return
  }
}

</mosaic_0001>

<bundles_post_ra>
// kernel: seq2seq_forward.1
= control target key start
LH: loop header
LB: loop body
LE: loop exit
PB: predicated region body
PF: predicated region fallthrough
CT: control target
= control target key end

     0   :  { %vm43_vm0 = vcmask 130048   ;;  %v1383_v7 = vmov 0.0   ;;  %s1384_s27 = smov 64   ;;  %vm123_vm5 = vcmask 261120   ;;  %s1661_s2 = inlined_call_operand.vmem [shape: f32[16,128], index: 2, kind: input, shape index: {}]   ;;  %s1662_s3 = inlined_call_operand.vmem [shape: f32[32,128], index: 3, kind: input, shape index: {}]   ;;  %s1663_s0 = inlined_call_operand.vmem [shape: f32[16,16], index: 0, kind: input, shape index: {}]   ;;  %s1664_s4 = inlined_call_operand.vmem [shape: f32[1,128], index: 4, kind: input, shape index: {}]   ;;  %s1665_s5 = inlined_call_operand.vmem [shape: f32[16,128], index: 5, kind: input, shape index: {}]   ;;  %s1666_s1 = inlined_call_operand.vmem [shape: f32[16,16], index: 1, kind: input, shape index: {}]   ;;  %s1667_s7 = inlined_call_operand.vmem [shape: f32[1,128], index: 7, kind: input, shape index: {}]   ;;  %s1668_s6 = inlined_call_operand.vmem [shape: f32[32,128], index: 6, kind: input, shape index: {}]   ;;  %s1669_s8 = inlined_call_operand.vmem [shape: f32[32,128], index: 8, kind: input, shape index: {}]   ;;  %s1670_s9 = inlined_call_operand.vmem [shape: f32[1,128], index: 9, kind: input, shape index: {}]   ;;  %s1671_s10 = inlined_call_operand.vmem [shape: f32[16,128], index: 10, kind: output, shape index: {}]  }
   0x1   :  { %v38_v0 = vld [vmem:[%s1661_s2 + $0x8] sm:$0xff]  ;;  %v1447_v1 = vld [vmem:[%s1662_s3 + $0x18] sm:$0xff]  ;;  %v37_v2 = vld [vmem:[%s1661_s2] sm:$0xff] }
   0x2   :  { %64 = vmatpush.msra.mxu0 %v38_v0  ;;  %139 = vmatpush.msra.mxu2 %v1447_v1  ;;  %v1456_v3 = vld [vmem:[%s1662_s3 + $0x10] sm:$0xff]  ;;  %v35_v4 = vld [vmem:[%s1663_s0] sm:$0xff]  ;;  %v1464_v5 = vld [vmem:[%s1662_s3 + $0x8] sm:$0xff] }
   0x3   :  { %203 = vmatpush.msra.mxu3 %v1447_v1  ;;  %1247 = vmatpush.msra.mxu1 %v38_v0  ;;  %v1472_v6 = vld [vmem:[%s1662_s3] sm:$0xff] }
   0x4   :  { %65 = vmatpush.msra.mxu0 %v37_v2  ;;  %140 = vmatpush.msra.mxu2 %v1456_v3  ;;  %v1498_v8 = vld [vmem:[%s1664_s4] ss:$0 sm:$0xff]  ;;  %s1385_s4 = smov 32  }
   0x5   :  { %1210 = vmatmul.msk.f32.vlgmr.msra.gmra.mxu0 %vm43_vm0, %v35_v4  ;;  %204 = vmatpush.msra.mxu3 %v1456_v3 }
   0x6   :  { %141 = vmatpush.msra.mxu2 %v1464_v5  ;;  %1248 = vmatpush.msra.mxu1 %v37_v2 }
   0x7   :  { %205 = vmatpush.msra.mxu3 %v1464_v5  ;;  %395 = vmatpush.msrb.mxu0 %v1447_v1 }
   0x8   :  { %142 = vmatpush.msra.mxu2 %v1472_v6 }
   0x9   :  { %143 = vmatmul.f32.vlgmr.msra.gmra.mxu2 %v1383_v7  ;;  %206 = vmatpush.msra.mxu3 %v1472_v6 }
   0xa   :  { %267 = vmatpush.msrb.mxu2 %v1447_v1  ;;  %396 = vmatpush.msrb.mxu0 %v1456_v3 }
   0xb   :  { %331 = vmatpush.msrb.mxu3 %v1447_v1 }
   0xc   :  { %268 = vmatpush.msrb.mxu2 %v1456_v3  ;;  %397 = vmatpush.msrb.mxu0 %v1464_v5 }
   0xd   :  { %332 = vmatpush.msrb.mxu3 %v1456_v3 }
   0xe   :  { %269 = vmatpush.msrb.mxu2 %v1464_v5  ;;  %398 = vmatpush.msrb.mxu0 %v1472_v6 }
   0xf   :  { %333 = vmatpush.msrb.mxu3 %v1464_v5 }
  0x10   :  { %270 = vmatpush.msrb.mxu2 %v1472_v6 }
  0x11   :  { %334 = vmatpush.msrb.mxu3 %v1472_v6 }
  0x12   :  { %523 = vmatpush.msra.mxu2 %v1447_v1 }
  0x14   :  { %524 = vmatpush.msra.mxu2 %v1456_v3 }
  0x16   :  { %525 = vmatpush.msra.mxu2 %v1464_v5 }
  0x18   :  { %526 = vmatpush.msra.mxu2 %v1472_v6 }
  0x82   :  { %v67_v9 = vpop.f32.mrf.mxu0 }
  0x83   :  { %v68_v10 = vadd.f32 %v1498_v8, %v67_v9 }
  0x85   :  { %73 = vst [vmem:[#allocation2] sm:$0xff] %v68_v10 }
  0x8c   :  { %v122_v11 = vld [vmem:[#allocation2] sm:$0x3]  ;;  %v144_v12 = vpop.f32.mrf.mxu2  ;;  %v185_v37 = vld [vmem:[#allocation2 + $0x2] sm:$0x3]  ;;  %v249_v63 = vld [vmem:[#allocation2 + $0x4] sm:$0x3] }
  0x8d   :  { %v147_v13 = vadd.f32 %v144_v12, %v122_v11 }
  0x8f   :  { %1255 = vtanh.f32 %v147_v13  ;;  %v1214_v15 = vmul.f32 -1.442695, %v147_v13 }
  0x91   :  { %1257 = vpow2.f32 %v1214_v15 }
  0x95   :  { %v1256_v14 = vpop.eup %1255 }
  0x96   :  { %170 = vrot.lane.b32.xlu0 %v1256_v14, %s1384_s27 }
  0x97   :  { %v1258_v16 = vpop.eup %1257 }
  0x98   :  { %v151_v17 = vadd.f32 1.0, %v1258_v16 }
  0x9a   :  { %1259 = vrcp.f32 %v151_v17  ;;  %v163_v23 = vand.u32 2147483648, %v151_v17  ;;  %vm157_vm2 = vweird.f32 %v151_v17  ;;  %v161_v24 = vand.u32 2147483647, %v151_v17 }
  0x9c   :  { %v164_v26 = vor.u32 1.1754944e-38, %v163_v23  ;;  %vm162_vm4 = vcmp.eq.f32.partialorder %v161_v24, 8.507059e+37 }
  0xa0   :  { %v1260_v18 = vpop.eup %1259 }
  0xa1   :  { %v153_v19 = vmul.f32 %v1260_v18, %v151_v17  ;;  %vm158_vm1 = vweird.f32 %v1260_v18 }
  0xa2   :  { %vm159_vm3 = vmor %vm157_vm2, %vm158_vm1 }
  0xa3   :  { %v154_v20 = vsub.f32 1.0, %v153_v19 }
  0xa5   :  { %v155_v21 = vmul.f32 %v1260_v18, %v154_v20 }
  0xa7   :  { %v156_v22 = vadd.f32 %v1260_v18, %v155_v21 }
  0xa9   :  { %v160_v25 = vsel %vm159_vm3, %v1260_v18, %v156_v22 }
  0xaa   :  { %v165_v28 = vsel %vm162_vm4, %v164_v26, %v160_v25 }
  0xab   :  { %v168_v30 = vmul.f32 0.0, %v165_v28 }
 0x108   :  { %v171_v27 = vpop.permute.xlu0 %170 }
 0x109   :  { %v173_v29 = vmul.f32 %v171_v27, %v165_v28 }
 0x10b   :  { %175 = vrot.lane.b32.xlu0 %v173_v29, %s1385_s4 }
 0x17d   :  { %v176_v31 = vpop.permute.xlu0 %175 }
 0x17e   :  { %v178_v32 = vadd.f32 %v176_v31, %v168_v30  ;;  %v313_v30 = vld [vmem:[#allocation2 + $0x6] sm:$0x3] }
 0x180   :  { %1261 = vtanh.f32 %v178_v32 }
 0x186   :  { %v1262_v33 = vpop.eup %1261 }
 0x187   :  { %181 = vrot.lane.b32.xlu1 %v1262_v33, %s1384_s27 }
 0x1f9   :  { %v182_v34 = vpop.permute.xlu1 %181 }
 0x1fa   :  { %v184_v35 = vmul.f32 %v182_v34, %v165_v28 }
 0x1fc   :  { %187 = vrot.lane.b32.xlu1 %v184_v35, %s1385_s4 }
 0x26e   :  { %v188_v36 = vpop.permute.xlu1 %187 }
 0x26f   :  { %1215 = vmatmul.msk.f32.vlgmr.msra.gmra.mxu3 %vm123_vm5, %v188_v36 }
 0x270   :  { %587 = vmatpush.msra.mxu3 %v1447_v1 }
 0x272   :  { %588 = vmatpush.msra.mxu3 %v1456_v3 }
 0x274   :  { %589 = vmatpush.msra.mxu3 %v1464_v5 }
 0x276   :  { %590 = vmatpush.msra.mxu3 %v1472_v6 }
 0x2f2   :  { %v208_v38 = vpop.f32.mrf.mxu3 }
 0x2f3   :  { %v211_v39 = vadd.f32 %v208_v38, %v185_v37 }
 0x2f5   :  { %1263 = vtanh.f32 %v211_v39  ;;  %v1216_v41 = vmul.f32 -1.442695, %v211_v39 }
 0x2f7   :  { %1265 = vpow2.f32 %v1216_v41 }
 0x2fb   :  { %v1264_v40 = vpop.eup %1263 }
 0x2fc   :  { %234 = vrot.lane.b32.xlu2 %v1264_v40, %s1384_s27 }
 0x2fd   :  { %v1266_v42 = vpop.eup %1265 }
 0x2fe   :  { %v215_v43 = vadd.f32 1.0, %v1266_v42 }
 0x300   :  { %1267 = vrcp.f32 %v215_v43  ;;  %v227_v49 = vand.u32 2147483648, %v215_v43  ;;  %vm221_vm7 = vweird.f32 %v215_v43  ;;  %v225_v50 = vand.u32 2147483647, %v215_v43 }
 0x302   :  { %v228_v52 = vor.u32 1.1754944e-38, %v227_v49  ;;  %vm226_vm9 = vcmp.eq.f32.partialorder %v225_v50, 8.507059e+37 }
 0x306   :  { %v1268_v44 = vpop.eup %1267 }
 0x307   :  { %v217_v45 = vmul.f32 %v1268_v44, %v215_v43  ;;  %vm222_vm6 = vweird.f32 %v1268_v44 }
 0x308   :  { %vm223_vm8 = vmor %vm221_vm7, %vm222_vm6 }
 0x309   :  { %v218_v46 = vsub.f32 1.0, %v217_v45 }
 0x30b   :  { %v219_v47 = vmul.f32 %v1268_v44, %v218_v46 }
 0x30d   :  { %v220_v48 = vadd.f32 %v1268_v44, %v219_v47 }
 0x30f   :  { %v224_v51 = vsel %vm223_vm8, %v1268_v44, %v220_v48 }
 0x310   :  { %v229_v54 = vsel %vm226_vm9, %v228_v52, %v224_v51 }
 0x311   :  { %v232_v56 = vmul.f32 %v229_v54, %v178_v32 }
 0x356   :  { %v235_v53 = vpop.permute.xlu2 %234 }
 0x357   :  { %v237_v55 = vmul.f32 %v235_v53, %v229_v54  ;;  %v36_v53 = vld [vmem:[%s1663_s0 + $0x8] sm:$0xff] }
 0x358   :  { %1211 = vmatmul.msk.f32.vlgmr.msra.gmra.mxu1 %vm43_vm0, %v36_v53 }
 0x359   :  { %239 = vrot.lane.b32.xlu2 %v237_v55, %s1385_s4 }
 0x3b3   :  { %v240_v57 = vpop.permute.xlu2 %239 }
 0x3b4   :  { %v242_v58 = vadd.f32 %v240_v57, %v232_v56 }
 0x3b6   :  { %1269 = vtanh.f32 %v242_v58 }
 0x3bc   :  { %v1270_v59 = vpop.eup %1269 }
 0x3bd   :  { %245 = vrot.lane.b32.xlu0 %v1270_v59, %s1384_s27 }
 0x3d5   :  { %v70_v56 = vpop.f32.mrf.mxu1 }
 0x3d6   :  { %v71_v57 = vadd.f32 %v1498_v8, %v70_v56 }
 0x3d8   :  { %74 = vst [vmem:[#allocation2 + $0x8] sm:$0xff] %v71_v57 }
 0x3df   :  { %v377_v59 = vld [vmem:[#allocation2 + $0x8] sm:$0x3]  ;;  %v505_v56 = vld [vmem:[#allocation2 + $0xc] sm:$0x3] }
 0x42f   :  { %v246_v60 = vpop.permute.xlu0 %245 }
 0x430   :  { %v248_v61 = vmul.f32 %v246_v60, %v229_v54 }
 0x432   :  { %251 = vrot.lane.b32.xlu1 %v248_v61, %s1385_s4 }
 0x4a4   :  { %v252_v62 = vpop.permute.xlu1 %251 }
 0x4a5   :  { %1217 = vmatmul.msk.f32.vlgmr.msrb.gmra.mxu2 %vm123_vm5, %v252_v62 }
 0x528   :  { %v272_v0 = vpop.f32.mrf.mxu2 }
 0x529   :  { %v275_v2 = vadd.f32 %v272_v0, %v249_v63 }
 0x52b   :  { %1271 = vtanh.f32 %v275_v2  ;;  %v1218_v7 = vmul.f32 -1.442695, %v275_v2 }
 0x52d   :  { %1273 = vpow2.f32 %v1218_v7 }
 0x531   :  { %v1272_v4 = vpop.eup %1271 }
 0x532   :  { %298 = vrot.lane.b32.xlu2 %v1272_v4, %s1384_s27 }
 0x533   :  { %v1274_v9 = vpop.eup %1273 }
 0x534   :  { %v279_v10 = vadd.f32 1.0, %v1274_v9 }
 0x536   :  { %1275 = vrcp.f32 %v279_v10  ;;  %v291_v16 = vand.u32 2147483648, %v279_v10  ;;  %vm285_vm11 = vweird.f32 %v279_v10  ;;  %v289_v17 = vand.u32 2147483647, %v279_v10 }
 0x538   :  { %v292_v19 = vor.u32 1.1754944e-38, %v291_v16  ;;  %vm290_vm13 = vcmp.eq.f32.partialorder %v289_v17, 8.507059e+37 }
 0x53c   :  { %v1276_v11 = vpop.eup %1275 }
 0x53d   :  { %v281_v12 = vmul.f32 %v1276_v11, %v279_v10  ;;  %vm286_vm10 = vweird.f32 %v1276_v11 }
 0x53e   :  { %vm287_vm12 = vmor %vm285_vm11, %vm286_vm10 }
 0x53f   :  { %v282_v13 = vsub.f32 1.0, %v281_v12 }
 0x541   :  { %v283_v14 = vmul.f32 %v1276_v11, %v282_v13 }
 0x543   :  { %v284_v15 = vadd.f32 %v1276_v11, %v283_v14 }
 0x545   :  { %v288_v18 = vsel %vm287_vm12, %v1276_v11, %v284_v15 }
 0x546   :  { %v293_v21 = vsel %vm290_vm13, %v292_v19, %v288_v18 }
 0x547   :  { %v296_v23 = vmul.f32 %v293_v21, %v242_v58 }
 0x58c   :  { %v299_v20 = vpop.permute.xlu2 %298 }
 0x58d   :  { %v301_v22 = vmul.f32 %v299_v20, %v293_v21 }
 0x58f   :  { %303 = vrot.lane.b32.xlu0 %v301_v22, %s1385_s4  ;;  %v78_v22 = vld [vmem:[%s1665_s5 + $0x8] sm:$0xff] }
 0x590   :  { %103 = vmatpush.msrb.mxu1 %v78_v22  ;;  %v569_v22 = vld [vmem:[#allocation2 + $0xe] sm:$0x3] }
 0x601   :  { %v304_v24 = vpop.permute.xlu0 %303 }
 0x602   :  { %v306_v25 = vadd.f32 %v304_v24, %v296_v23  ;;  %v77_v23 = vld [vmem:[%s1665_s5] sm:$0xff] }
 0x603   :  { %v75_v24 = vld [vmem:[%s1666_s1] sm:$0xff]  ;;  %104 = vmatpush.msrb.mxu1 %v77_v23 }
 0x604   :  { %1277 = vtanh.f32 %v306_v25  ;;  %1212 = vmatmul.msk.f32.vlgmr.msrb.gmra.mxu1 %vm43_vm0, %v75_v24 }
 0x605   :  { %459 = vmatpush.msra.mxu1 %v1447_v1  ;;  %v1253_v1 = vld [vmem:[%s1667_s7] ss:$0 sm:$0xff] }
 0x607   :  { %460 = vmatpush.msra.mxu1 %v1456_v3 }
 0x609   :  { %461 = vmatpush.msra.mxu1 %v1464_v5  ;;  %v441_v5 = vld [vmem:[#allocation2 + $0xa] sm:$0x3] }
 0x60a   :  { %v1278_v26 = vpop.eup %1277 }
 0x60b   :  { %309 = vrot.lane.b32.xlu1 %v1278_v26, %s1384_s27  ;;  %462 = vmatpush.msra.mxu1 %v1472_v6 }
 0x67d   :  { %v310_v27 = vpop.permute.xlu1 %309 }
 0x67e   :  { %v312_v28 = vmul.f32 %v310_v27, %v293_v21 }
 0x680   :  { %315 = vrot.lane.b32.xlu2 %v312_v28, %s1385_s4 }
 0x681   :  { %v106_v28 = vpop.f32.mrf.mxu1 }
 0x682   :  { %v107_v3 = vadd.f32 %v1253_v1, %v106_v28 }
 0x684   :  { %112 = vst [vmem:[#allocation3] sm:$0xff] %v107_v3 }
 0x6da   :  { %v316_v29 = vpop.permute.xlu2 %315 }
 0x6db   :  { %1219 = vmatmul.msk.f32.vlgmr.msrb.gmra.mxu3 %vm123_vm5, %v316_v29 }
 0x75e   :  { %v336_v31 = vpop.f32.mrf.mxu3 }
 0x75f   :  { %v339_v32 = vadd.f32 %v336_v31, %v313_v30 }
 0x761   :  { %1279 = vtanh.f32 %v339_v32  ;;  %v1220_v34 = vmul.f32 -1.442695, %v339_v32 }
 0x763   :  { %1281 = vpow2.f32 %v1220_v34 }
 0x767   :  { %v1280_v33 = vpop.eup %1279 }
 0x768   :  { %362 = vrot.lane.b32.xlu0 %v1280_v33, %s1384_s27 }
 0x769   :  { %v1282_v35 = vpop.eup %1281 }
 0x76a   :  { %v343_v36 = vadd.f32 1.0, %v1282_v35 }
 0x76c   :  { %1283 = vrcp.f32 %v343_v36  ;;  %v355_v42 = vand.u32 2147483648, %v343_v36  ;;  %vm349_vm15 = vweird.f32 %v343_v36  ;;  %v353_v43 = vand.u32 2147483647, %v343_v36 }
 0x76e   :  { %v356_v45 = vor.u32 1.1754944e-38, %v355_v42  ;;  %vm354_vm2 = vcmp.eq.f32.partialorder %v353_v43, 8.507059e+37 }
 0x772   :  { %v1284_v37 = vpop.eup %1283 }
 0x773   :  { %v345_v38 = vmul.f32 %v1284_v37, %v343_v36  ;;  %vm350_vm14 = vweird.f32 %v1284_v37 }
 0x774   :  { %vm351_vm1 = vmor %vm349_vm15, %vm350_vm14 }
 0x775   :  { %v346_v39 = vsub.f32 1.0, %v345_v38 }
 0x777   :  { %v347_v40 = vmul.f32 %v1284_v37, %v346_v39 }
 0x779   :  { %v348_v41 = vadd.f32 %v1284_v37, %v347_v40 }
 0x77b   :  { %v352_v44 = vsel %vm351_vm1, %v1284_v37, %v348_v41 }
 0x77c   :  { %v357_v47 = vsel %vm354_vm2, %v356_v45, %v352_v44 }
 0x77d   :  { %v360_v49 = vmul.f32 %v357_v47, %v306_v25  ;;  %v76_v25 = vld [vmem:[%s1666_s1 + $0x8] sm:$0xff] }
 0x77e   :  { %1213 = vmatmul.msk.f32.gmra.mxu1 %vm43_vm0, %v76_v25 }
 0x7da   :  { %v363_v46 = vpop.permute.xlu0 %362 }
 0x7db   :  { %v365_v48 = vmul.f32 %v363_v46, %v357_v47 }
 0x7dd   :  { %367 = vrot.lane.b32.xlu1 %v365_v48, %s1385_s4 }
 0x7fb   :  { %v109_v29 = vpop.f32.mrf.mxu1 }
 0x7fc   :  { %v110_v30 = vadd.f32 %v1253_v1, %v109_v29 }
 0x7fe   :  { %113 = vst [vmem:[#allocation3 + $0x8] sm:$0xff] %v110_v30 }
 0x84f   :  { %v368_v50 = vpop.permute.xlu1 %367 }
 0x850   :  { %v370_v51 = vadd.f32 %v368_v50, %v360_v49 }
 0x852   :  { %1285 = vtanh.f32 %v370_v51 }
 0x858   :  { %v1286_v52 = vpop.eup %1285 }
 0x859   :  { %373 = vrot.lane.b32.xlu2 %v1286_v52, %s1384_s27 }
 0x8b3   :  { %v374_v54 = vpop.permute.xlu2 %373 }
 0x8b4   :  { %v376_v55 = vmul.f32 %v374_v54, %v357_v47 }
 0x8b6   :  { %379 = vrot.lane.b32.xlu0 %v376_v55, %s1385_s4 }
 0x928   :  { %v380_v58 = vpop.permute.xlu0 %379 }
 0x929   :  { %1221 = vmatmul.msk.f32.vlgmr.msrb.gmra.mxu0 %vm123_vm5, %v380_v58 }
 0x9a6   :  { %v400_v60 = vpop.f32.mrf.mxu0 }
 0x9a7   :  { %v403_v61 = vadd.f32 %v400_v60, %v377_v59 }
 0x9a9   :  { %1287 = vtanh.f32 %v403_v61  ;;  %v1222_v63 = vmul.f32 -1.442695, %v403_v61 }
 0x9ab   :  { %1289 = vpow2.f32 %v1222_v63 }
 0x9af   :  { %v1288_v62 = vpop.eup %1287 }
 0x9b0   :  { %426 = vrot.lane.b32.xlu1 %v1288_v62, %s1384_s27 }
 0x9b1   :  { %v1290_v0 = vpop.eup %1289 }
 0x9b2   :  { %v407_v2 = vadd.f32 1.0, %v1290_v0 }
 0x9b4   :  { %1291 = vrcp.f32 %v407_v2  ;;  %v419_v11 = vand.u32 2147483648, %v407_v2  ;;  %vm413_vm4 = vweird.f32 %v407_v2  ;;  %v417_v12 = vand.u32 2147483647, %v407_v2 }
 0x9b6   :  { %v420_v14 = vor.u32 1.1754944e-38, %v419_v11  ;;  %vm418_vm7 = vcmp.eq.f32.partialorder %v417_v12, 8.507059e+37 }
 0x9ba   :  { %v1292_v4 = vpop.eup %1291 }
 0x9bb   :  { %v409_v7 = vmul.f32 %v1292_v4, %v407_v2  ;;  %vm414_vm3 = vweird.f32 %v1292_v4 }
 0x9bc   :  { %vm415_vm6 = vmor %vm413_vm4, %vm414_vm3 }
 0x9bd   :  { %v410_v9 = vsub.f32 1.0, %v409_v7 }
 0x9bf   :  { %v411_v8 = vmul.f32 %v1292_v4, %v410_v9 }
 0x9c1   :  { %v412_v10 = vadd.f32 %v1292_v4, %v411_v8 }
 0x9c3   :  { %v416_v13 = vsel %vm415_vm6, %v1292_v4, %v412_v10 }
 0x9c4   :  { %v421_v16 = vsel %vm418_vm7, %v420_v14, %v416_v13 }
 0x9c5   :  { %v424_v18 = vmul.f32 %v421_v16, %v370_v51 }
 0xa22   :  { %v427_v15 = vpop.permute.xlu1 %426 }
 0xa23   :  { %v429_v17 = vmul.f32 %v427_v15, %v421_v16 }
 0xa25   :  { %431 = vrot.lane.b32.xlu2 %v429_v17, %s1385_s4 }
 0xa7f   :  { %v432_v19 = vpop.permute.xlu2 %431 }
 0xa80   :  { %v434_v20 = vadd.f32 %v432_v19, %v424_v18 }
 0xa82   :  { %1293 = vtanh.f32 %v434_v20 }
 0xa88   :  { %v1294_v21 = vpop.eup %1293 }
 0xa89   :  { %437 = vrot.lane.b32.xlu0 %v1294_v21, %s1384_s27 }
 0xafb   :  { %v438_v26 = vpop.permute.xlu0 %437 }
 0xafc   :  { %v440_v27 = vmul.f32 %v438_v26, %v421_v16 }
 0xafe   :  { %443 = vrot.lane.b32.xlu1 %v440_v27, %s1385_s4 }
 0xb70   :  { %v444_v31 = vpop.permute.xlu1 %443 }
 0xb71   :  { %1223 = vmatmul.msk.f32.vlgmr.msra.gmra.mxu1 %vm123_vm5, %v444_v31 }
 0xbee   :  { %v464_v6 = vpop.f32.mrf.mxu1 }
 0xbef   :  { %v467_v32 = vadd.f32 %v464_v6, %v441_v5 }
 0xbf1   :  { %1295 = vtanh.f32 %v467_v32  ;;  %v1224_v34 = vmul.f32 -1.442695, %v467_v32 }
 0xbf3   :  { %1297 = vpow2.f32 %v1224_v34 }
 0xbf7   :  { %v1296_v33 = vpop.eup %1295 }
 0xbf8   :  { %490 = vrot.lane.b32.xlu2 %v1296_v33, %s1384_s27 }
 0xbf9   :  { %v1298_v35 = vpop.eup %1297 }
 0xbfa   :  { %v471_v36 = vadd.f32 1.0, %v1298_v35 }
 0xbfc   :  { %1299 = vrcp.f32 %v471_v36  ;;  %v483_v42 = vand.u32 2147483648, %v471_v36  ;;  %vm477_vm8 = vweird.f32 %v471_v36  ;;  %v481_v43 = vand.u32 2147483647, %v471_v36 }
 0xbfe   :  { %v484_v45 = vor.u32 1.1754944e-38, %v483_v42  ;;  %vm482_vm10 = vcmp.eq.f32.partialorder %v481_v43, 8.507059e+37  ;;  %v120_v42 = vld [vmem:[%s1668_s6 + $0x10] sm:$0xff]  ;;  %v119_v43 = vld [vmem:[%s1668_s6 + $0x8] sm:$0xff] }
 0xc02   :  { %v1300_v37 = vpop.eup %1299 }
 0xc03   :  { %v473_v38 = vmul.f32 %v1300_v37, %v471_v36  ;;  %vm478_vm0 = vweird.f32 %v1300_v37 }
 0xc04   :  { %vm479_vm9 = vmor %vm477_vm8, %vm478_vm0  ;;  %vm701_vm8 = vcmask 254976  }
 0xc05   :  { %v474_v39 = vsub.f32 1.0, %v473_v38 }
 0xc07   :  { %v475_v40 = vmul.f32 %v1300_v37, %v474_v39 }
 0xc09   :  { %v476_v41 = vadd.f32 %v1300_v37, %v475_v40 }
 0xc0b   :  { %v480_v44 = vsel %vm479_vm9, %v1300_v37, %v476_v41  ;;  %v121_v41 = vld [vmem:[%s1668_s6 + $0x18] sm:$0xff] }
 0xc0c   :  { %v485_v47 = vsel %vm482_vm10, %v484_v45, %v480_v44  ;;  %651 = vmatpush.msra.mxu0 %v121_v41  ;;  %718 = vmatpush.msrb.mxu1 %v121_v41  ;;  %v118_v44 = vld [vmem:[%s1668_s6] sm:$0xff] }
 0xc0d   :  { %v488_v49 = vmul.f32 %v485_v47, %v434_v20  ;;  %784 = vmatpush.msrb.mxu2 %v121_v41  ;;  %850 = vmatpush.msrb.mxu3 %v121_v41 }
 0xc0e   :  { %652 = vmatpush.msra.mxu0 %v120_v42  ;;  %719 = vmatpush.msrb.mxu1 %v120_v42 }
 0xc0f   :  { %785 = vmatpush.msrb.mxu2 %v120_v42  ;;  %851 = vmatpush.msrb.mxu3 %v120_v42 }
 0xc10   :  { %653 = vmatpush.msra.mxu0 %v119_v43  ;;  %720 = vmatpush.msrb.mxu1 %v119_v43 }
 0xc11   :  { %786 = vmatpush.msrb.mxu2 %v119_v43  ;;  %852 = vmatpush.msrb.mxu3 %v119_v43 }
 0xc12   :  { %654 = vmatpush.msra.mxu0 %v118_v44  ;;  %721 = vmatpush.msrb.mxu1 %v118_v44 }
 0xc13   :  { %787 = vmatpush.msrb.mxu2 %v118_v44  ;;  %853 = vmatpush.msrb.mxu3 %v118_v44 }
 0xc14   :  { %916 = vmatpush.msrb.mxu0 %v121_v41  ;;  %982 = vmatpush.msra.mxu1 %v121_v41 }
 0xc16   :  { %917 = vmatpush.msrb.mxu0 %v120_v42  ;;  %983 = vmatpush.msra.mxu1 %v120_v42 }
 0xc18   :  { %918 = vmatpush.msrb.mxu0 %v119_v43  ;;  %984 = vmatpush.msra.mxu1 %v119_v43 }
 0xc1a   :  { %919 = vmatpush.msrb.mxu0 %v118_v44  ;;  %985 = vmatpush.msra.mxu1 %v118_v44 }
 0xc52   :  { %v491_v46 = vpop.permute.xlu2 %490 }
 0xc53   :  { %v493_v48 = vmul.f32 %v491_v46, %v485_v47 }
 0xc55   :  { %495 = vrot.lane.b32.xlu0 %v493_v48, %s1385_s4  ;;  %v633_v48 = vld [vmem:[#allocation3] sm:$0x3] }
 0xcc7   :  { %v496_v50 = vpop.permute.xlu0 %495 }
 0xcc8   :  { %v498_v51 = vadd.f32 %v496_v50, %v488_v49 }
 0xcca   :  { %1301 = vtanh.f32 %v498_v51 }
 0xcd0   :  { %v1302_v52 = vpop.eup %1301 }
 0xcd1   :  { %501 = vrot.lane.b32.xlu1 %v1302_v52, %s1384_s27 }
 0xd43   :  { %v502_v53 = vpop.permute.xlu1 %501 }
 0xd44   :  { %v504_v54 = vmul.f32 %v502_v53, %v485_v47 }
 0xd46   :  { %507 = vrot.lane.b32.xlu2 %v504_v54, %s1385_s4 }
 0xda0   :  { %v508_v55 = vpop.permute.xlu2 %507 }
 0xda1   :  { %1225 = vmatmul.msk.f32.vlgmr.msra.gmra.mxu2 %vm123_vm5, %v508_v55 }
 0xda2   :  { %1048 = vmatpush.msra.mxu2 %v121_v41 }
 0xda4   :  { %1049 = vmatpush.msra.mxu2 %v120_v42 }
 0xda6   :  { %1050 = vmatpush.msra.mxu2 %v119_v43 }
 0xda8   :  { %1051 = vmatpush.msra.mxu2 %v118_v44 }
 0xe24   :  { %v528_v57 = vpop.f32.mrf.mxu2 }
 0xe25   :  { %v531_v58 = vadd.f32 %v528_v57, %v505_v56 }
 0xe27   :  { %1303 = vtanh.f32 %v531_v58  ;;  %v1226_v60 = vmul.f32 -1.442695, %v531_v58 }
 0xe29   :  { %1305 = vpow2.f32 %v1226_v60 }
 0xe2d   :  { %v1304_v59 = vpop.eup %1303 }
 0xe2e   :  { %554 = vrot.lane.b32.xlu0 %v1304_v59, %s1384_s27 }
 0xe2f   :  { %v1306_v61 = vpop.eup %1305 }
 0xe30   :  { %v535_v62 = vadd.f32 1.0, %v1306_v61 }
 0xe32   :  { %1307 = vrcp.f32 %v535_v62  ;;  %v547_v9 = vand.u32 2147483648, %v535_v62  ;;  %vm541_vm12 = vweird.f32 %v535_v62  ;;  %v545_v8 = vand.u32 2147483647, %v535_v62 }
 0xe34   :  { %v548_v11 = vor.u32 1.1754944e-38, %v547_v9  ;;  %vm546_vm14 = vcmp.eq.f32.partialorder %v545_v8, 8.507059e+37 }
 0xe38   :  { %v1308_v63 = vpop.eup %1307 }
 0xe39   :  { %v537_v0 = vmul.f32 %v1308_v63, %v535_v62  ;;  %vm542_vm11 = vweird.f32 %v1308_v63 }
 0xe3a   :  { %vm543_vm13 = vmor %vm541_vm12, %vm542_vm11 }
 0xe3b   :  { %v538_v2 = vsub.f32 1.0, %v537_v0 }
 0xe3d   :  { %v539_v4 = vmul.f32 %v1308_v63, %v538_v2 }
 0xe3f   :  { %v540_v7 = vadd.f32 %v1308_v63, %v539_v4 }
 0xe41   :  { %v544_v10 = vsel %vm543_vm13, %v1308_v63, %v540_v7 }
 0xe42   :  { %v549_v13 = vsel %vm546_vm14, %v548_v11, %v544_v10 }
 0xe43   :  { %v552_v15 = vmul.f32 %v549_v13, %v498_v51 }
 0xea0   :  { %v555_v12 = vpop.permute.xlu0 %554 }
 0xea1   :  { %v557_v14 = vmul.f32 %v555_v12, %v549_v13 }
 0xea3   :  { %559 = vrot.lane.b32.xlu1 %v557_v14, %s1385_s4  ;;  %v703_v14 = vld [vmem:[#allocation3 + $0x2] sm:$0x3] }
 0xf15   :  { %v560_v16 = vpop.permute.xlu1 %559 }
 0xf16   :  { %v562_v17 = vadd.f32 %v560_v16, %v552_v15 }
 0xf18   :  { %1309 = vtanh.f32 %v562_v17 }
 0xf1e   :  { %v1310_v18 = vpop.eup %1309 }
 0xf1f   :  { %565 = vrot.lane.b32.xlu2 %v1310_v18, %s1384_s27 }
 0xf79   :  { %v566_v19 = vpop.permute.xlu2 %565 }
 0xf7a   :  { %v568_v20 = vmul.f32 %v566_v19, %v549_v13 }
 0xf7c   :  { %571 = vrot.lane.b32.xlu0 %v568_v20, %s1385_s4 }
 0xfee   :  { %v572_v21 = vpop.permute.xlu0 %571 }
 0xfef   :  { %1227 = vmatmul.msk.f32.vlgmr.msra.gmra.mxu3 %vm123_vm5, %v572_v21 }
 0xff0   :  { %1114 = vmatpush.msra.mxu3 %v121_v41 }
 0xff2   :  { %1115 = vmatpush.msra.mxu3 %v120_v42 }
 0xff4   :  { %1116 = vmatpush.msra.mxu3 %v119_v43 }
 0xff6   :  { %1117 = vmatpush.msra.mxu3 %v118_v44 }
0x1072   :  { %v592_v23 = vpop.f32.mrf.mxu3 }
0x1073   :  { %v595_v24 = vadd.f32 %v592_v23, %v569_v22 }
0x1075   :  { %1311 = vtanh.f32 %v595_v24  ;;  %v1228_v26 = vmul.f32 -1.442695, %v595_v24 }
0x1077   :  { %1313 = vpow2.f32 %v1228_v26 }
0x107b   :  { %v1312_v25 = vpop.eup %1311 }
0x107c   :  { %618 = vrot.lane.b32.xlu1 %v1312_v25, %s1384_s27 }
0x107d   :  { %v1314_v27 = vpop.eup %1313 }
0x107e   :  { %v599_v1 = vadd.f32 1.0, %v1314_v27 }
0x1080   :  { %1315 = vrcp.f32 %v599_v1  ;;  %v611_v5 = vand.u32 2147483648, %v599_v1  ;;  %vm605_vm1 = vweird.f32 %v599_v1  ;;  %v609_v6 = vand.u32 2147483647, %v599_v1 }
0x1082   :  { %v612_v33 = vor.u32 1.1754944e-38, %v611_v5  ;;  %vm610_vm3 = vcmp.eq.f32.partialorder %v609_v6, 8.507059e+37 }
0x1086   :  { %v1316_v28 = vpop.eup %1315 }
0x1087   :  { %v601_v3 = vmul.f32 %v1316_v28, %v599_v1  ;;  %vm606_vm15 = vweird.f32 %v1316_v28 }
0x1088   :  { %vm607_vm2 = vmor %vm605_vm1, %vm606_vm15 }
0x1089   :  { %v602_v29 = vsub.f32 1.0, %v601_v3 }
0x108b   :  { %v603_v30 = vmul.f32 %v1316_v28, %v602_v29 }
0x108d   :  { %v604_v31 = vadd.f32 %v1316_v28, %v603_v30 }
0x108f   :  { %v608_v32 = vsel %vm607_vm2, %v1316_v28, %v604_v31 }
0x1090   :  { %v613_v35 = vsel %vm610_vm3, %v612_v33, %v608_v32 }
0x1091   :  { %v616_v37 = vmul.f32 %v613_v35, %v562_v17 }
0x10ee   :  { %v619_v34 = vpop.permute.xlu1 %618 }
0x10ef   :  { %v621_v36 = vmul.f32 %v619_v34, %v613_v35 }
0x10f1   :  { %623 = vrot.lane.b32.xlu2 %v621_v36, %s1385_s4  ;;  %v769_v36 = vld [vmem:[#allocation3 + $0x4] sm:$0x3] }
0x114b   :  { %v624_v38 = vpop.permute.xlu2 %623 }
0x114c   :  { %v1568_v39 = vadd.f32 %v624_v38, %v616_v37 }
0x114e   :  { %1317 = vtanh.f32 %v1568_v39 }
0x1154   :  { %v1318_v40 = vpop.eup %1317 }
0x1155   :  { %629 = vrot.lane.b32.xlu0 %v1318_v40, %s1384_s27 }
0x11c7   :  { %v630_v45 = vpop.permute.xlu0 %629 }
0x11c8   :  { %v632_v46 = vmul.f32 %v630_v45, %v613_v35 }
0x11ca   :  { %635 = vrot.lane.b32.xlu1 %v632_v46, %s1385_s4 }
0x123c   :  { %v636_v47 = vpop.permute.xlu1 %635 }
0x123d   :  { %1229 = vmatmul.msk.f32.vlgmr.msra.gmra.mxu0 %vm123_vm5, %v636_v47 }
0x12ba   :  { %v656_v49 = vpop.f32.mrf.mxu0 }
0x12bb   :  { %v659_v50 = vadd.f32 %v656_v49, %v633_v48 }
0x12bd   :  { %1319 = vtanh.f32 %v659_v50  ;;  %v1230_v52 = vmul.f32 -1.442695, %v659_v50 }
0x12bf   :  { %1321 = vpow2.f32 %v1230_v52 }
0x12c3   :  { %v1320_v51 = vpop.eup %1319 }
0x12c4   :  { %682 = vrot.lane.b32.xlu2 %v1320_v51, %s1384_s27 }
0x12c5   :  { %v1322_v53 = vpop.eup %1321 }
0x12c6   :  { %v663_v54 = vadd.f32 1.0, %v1322_v53 }
0x12c8   :  { %1323 = vrcp.f32 %v663_v54  ;;  %v675_v60 = vand.u32 2147483648, %v663_v54  ;;  %vm669_vm6 = vweird.f32 %v663_v54  ;;  %v673_v61 = vand.u32 2147483647, %v663_v54 }
0x12ca   :  { %v676_v63 = vor.u32 1.1754944e-38, %v675_v60  ;;  %vm674_vm0 = vcmp.eq.f32.partialorder %v673_v61, 8.507059e+37 }
0x12ce   :  { %v1324_v55 = vpop.eup %1323 }
0x12cf   :  { %v665_v56 = vmul.f32 %v1324_v55, %v663_v54  ;;  %vm670_vm4 = vweird.f32 %v1324_v55 }
0x12d0   :  { %vm671_vm7 = vmor %vm669_vm6, %vm670_vm4 }
0x12d1   :  { %v666_v57 = vsub.f32 1.0, %v665_v56 }
0x12d3   :  { %v667_v58 = vmul.f32 %v1324_v55, %v666_v57 }
0x12d5   :  { %v668_v59 = vadd.f32 %v1324_v55, %v667_v58 }
0x12d7   :  { %v672_v62 = vsel %vm671_vm7, %v1324_v55, %v668_v59 }
0x12d8   :  { %v677_v2 = vsel %vm674_vm0, %v676_v63, %v672_v62  ;;  %v835_v62 = vld [vmem:[#allocation3 + $0x6] sm:$0x3] }
0x12d9   :  { %v680_v7 = vmul.f32 %v677_v2, %v1568_v39 }
0x131e   :  { %v683_v0 = vpop.permute.xlu2 %682 }
0x131f   :  { %v685_v4 = vmul.f32 %v683_v0, %v677_v2 }
0x1321   :  { %687 = vrot.lane.b32.xlu0 %v685_v4, %s1385_s4 }
0x1393   :  { %v688_v9 = vpop.permute.xlu0 %687 }
0x1394   :  { %v690_v8 = vadd.f32 %v688_v9, %v680_v7 }
0x1396   :  { %1325 = vtanh.f32 %v690_v8 }
0x139c   :  { %v1326_v10 = vpop.eup %1325 }
0x139d   :  { %693 = vrot.lane.b32.xlu1 %v1326_v10, %s1384_s27 }
0x140f   :  { %v694_v11 = vpop.permute.xlu1 %693 }
0x1410   :  { %v696_v12 = vmul.f32 %v694_v11, %v677_v2 }
0x1412   :  { %698 = vrot.lane.b32.xlu2 %v696_v12, %s1385_s4 }
0x146c   :  { %v699_v13 = vpop.permute.xlu2 %698 }
0x146d   :  { %702 = vst.msk [vmem:[#allocation4] sm:$0x3] %vm701_vm8, %v699_v13  ;;  %1231 = vmatmul.msk.f32.vlgmr.msrb.gmra.mxu1 %vm123_vm5, %v699_v13 }
0x14ea   :  { %v723_v15 = vpop.f32.mrf.mxu1 }
0x14eb   :  { %v726_v16 = vadd.f32 %v723_v15, %v703_v14 }
0x14ed   :  { %1327 = vtanh.f32 %v726_v16  ;;  %v1232_v18 = vmul.f32 -1.442695, %v726_v16 }
0x14ef   :  { %1329 = vpow2.f32 %v1232_v18 }
0x14f3   :  { %v1328_v17 = vpop.eup %1327 }
0x14f4   :  { %749 = vrot.lane.b32.xlu0 %v1328_v17, %s1384_s27 }
0x14f5   :  { %v1330_v19 = vpop.eup %1329 }
0x14f6   :  { %v730_v20 = vadd.f32 1.0, %v1330_v19 }
0x14f8   :  { %1331 = vrcp.f32 %v730_v20  ;;  %v742_v26 = vand.u32 2147483648, %v730_v20  ;;  %vm736_vm10 = vweird.f32 %v730_v20  ;;  %v740_v27 = vand.u32 2147483647, %v730_v20 }
0x14fa   :  { %v743_v28 = vor.u32 1.1754944e-38, %v742_v26  ;;  %vm741_vm12 = vcmp.eq.f32.partialorder %v740_v27, 8.507059e+37  ;;  %v1170_v27 = vld [vmem:[%s1669_s8 + $0x18] sm:$0xff] }
0x14fb   :  { %1193 = vmatpush.msra.mxu0 %v1170_v27 }
0x14fe   :  { %v1332_v21 = vpop.eup %1331 }
0x14ff   :  { %v732_v22 = vmul.f32 %v1332_v21, %v730_v20  ;;  %vm737_vm9 = vweird.f32 %v1332_v21 }
0x1500   :  { %vm738_vm11 = vmor %vm736_vm10, %vm737_vm9 }
0x1501   :  { %v733_v23 = vsub.f32 1.0, %v732_v22 }
0x1503   :  { %v734_v24 = vmul.f32 %v1332_v21, %v733_v23 }
0x1505   :  { %v735_v25 = vadd.f32 %v1332_v21, %v734_v24 }
0x1507   :  { %v739_v1 = vsel %vm738_vm11, %v1332_v21, %v735_v25 }
0x1508   :  { %v744_v29 = vsel %vm741_vm12, %v743_v28, %v739_v1  ;;  %v1169_v1 = vld [vmem:[%s1669_s8 + $0x10] sm:$0xff]  ;;  %v1168_v28 = vld [vmem:[%s1669_s8 + $0x8] sm:$0xff] }
0x1509   :  { %v747_v31 = vmul.f32 %v744_v29, %v690_v8  ;;  %1194 = vmatpush.msra.mxu0 %v1169_v1 }
0x150b   :  { %1195 = vmatpush.msra.mxu0 %v1168_v28 }
0x1566   :  { %v750_v3 = vpop.permute.xlu0 %749 }
0x1567   :  { %v752_v30 = vmul.f32 %v750_v3, %v744_v29  ;;  %v1167_v3 = vld [vmem:[%s1669_s8] sm:$0xff] }
0x1568   :  { %1196 = vmatpush.msra.mxu0 %v1167_v3 }
0x1569   :  { %754 = vrot.lane.b32.xlu1 %v752_v30, %s1385_s4 }
0x15db   :  { %v755_v5 = vpop.permute.xlu1 %754 }
0x15dc   :  { %v757_v6 = vadd.f32 %v755_v5, %v747_v31  ;;  %v901_v31 = vld [vmem:[#allocation3 + $0x8] sm:$0x3] }
0x15de   :  { %1333 = vtanh.f32 %v757_v6 }
0x15e4   :  { %v1334_v32 = vpop.eup %1333 }
0x15e5   :  { %760 = vrot.lane.b32.xlu2 %v1334_v32, %s1384_s27  ;;  %v1627_v32 = vld [vmem:[%s1670_s9] ss:$0 sm:$0xff] }
0x163f   :  { %v761_v33 = vpop.permute.xlu2 %760 }
0x1640   :  { %v763_v34 = vmul.f32 %v761_v33, %v744_v29 }
0x1642   :  { %765 = vrot.lane.b32.xlu0 %v763_v34, %s1385_s4 }
0x16b4   :  { %v766_v35 = vpop.permute.xlu0 %765 }
0x16b5   :  { %768 = vst.msk [vmem:[#allocation4 + $0x2] sm:$0x3] %vm701_vm8, %v766_v35  ;;  %1233 = vmatmul.msk.f32.vlgmr.msrb.gmra.mxu2 %vm123_vm5, %v766_v35 }
0x1738   :  { %v789_v37 = vpop.f32.mrf.mxu2 }
0x1739   :  { %v792_v38 = vadd.f32 %v789_v37, %v769_v36 }
0x173b   :  { %1335 = vtanh.f32 %v792_v38  ;;  %v1234_v40 = vmul.f32 -1.442695, %v792_v38 }
0x173d   :  { %1337 = vpow2.f32 %v1234_v40 }
0x1741   :  { %v1336_v39 = vpop.eup %1335 }
0x1742   :  { %815 = vrot.lane.b32.xlu1 %v1336_v39, %s1384_s27 }
0x1743   :  { %v1338_v41 = vpop.eup %1337 }
0x1744   :  { %v796_v42 = vadd.f32 1.0, %v1338_v41 }
0x1746   :  { %1339 = vrcp.f32 %v796_v42  ;;  %v808_v48 = vand.u32 2147483648, %v796_v42  ;;  %vm802_vm14 = vweird.f32 %v796_v42  ;;  %v806_v49 = vand.u32 2147483647, %v796_v42 }
0x1748   :  { %v809_v51 = vor.u32 1.1754944e-38, %v808_v48  ;;  %vm807_vm1 = vcmp.eq.f32.partialorder %v806_v49, 8.507059e+37 }
0x174c   :  { %v1340_v43 = vpop.eup %1339 }
0x174d   :  { %v798_v44 = vmul.f32 %v1340_v43, %v796_v42  ;;  %vm803_vm13 = vweird.f32 %v1340_v43 }
0x174e   :  { %vm804_vm15 = vmor %vm802_vm14, %vm803_vm13 }
0x174f   :  { %v799_v45 = vsub.f32 1.0, %v798_v44 }
0x1751   :  { %v800_v46 = vmul.f32 %v1340_v43, %v799_v45 }
0x1753   :  { %v801_v47 = vadd.f32 %v1340_v43, %v800_v46 }
0x1755   :  { %v805_v50 = vsel %vm804_vm15, %v1340_v43, %v801_v47 }
0x1756   :  { %v810_v53 = vsel %vm807_vm1, %v809_v51, %v805_v50 }
0x1757   :  { %v813_v55 = vmul.f32 %v810_v53, %v757_v6 }
0x17b4   :  { %v816_v52 = vpop.permute.xlu1 %815 }
0x17b5   :  { %v818_v54 = vmul.f32 %v816_v52, %v810_v53 }
0x17b7   :  { %820 = vrot.lane.b32.xlu2 %v818_v54, %s1385_s4 }
0x1811   :  { %v821_v56 = vpop.permute.xlu2 %820 }
0x1812   :  { %v823_v57 = vadd.f32 %v821_v56, %v813_v55 }
0x1814   :  { %1341 = vtanh.f32 %v823_v57 }
0x181a   :  { %v1342_v58 = vpop.eup %1341 }
0x181b   :  { %826 = vrot.lane.b32.xlu0 %v1342_v58, %s1384_s27  ;;  %v967_v58 = vld [vmem:[#allocation3 + $0xa] sm:$0x3] }
0x188d   :  { %v827_v59 = vpop.permute.xlu0 %826 }
0x188e   :  { %v829_v60 = vmul.f32 %v827_v59, %v810_v53 }
0x1890   :  { %831 = vrot.lane.b32.xlu1 %v829_v60, %s1385_s4 }
0x1902   :  { %v832_v61 = vpop.permute.xlu1 %831 }
0x1903   :  { %834 = vst.msk [vmem:[#allocation4 + $0x4] sm:$0x3] %vm701_vm8, %v832_v61  ;;  %1235 = vmatmul.msk.f32.vlgmr.msrb.gmra.mxu3 %vm123_vm5, %v832_v61 }
0x1986   :  { %v855_v63 = vpop.f32.mrf.mxu3 }
0x1987   :  { %v858_v0 = vadd.f32 %v855_v63, %v835_v62 }
0x1989   :  { %1343 = vtanh.f32 %v858_v0  ;;  %v1236_v4 = vmul.f32 -1.442695, %v858_v0 }
0x198b   :  { %1345 = vpow2.f32 %v1236_v4 }
0x198f   :  { %v1344_v2 = vpop.eup %1343 }
0x1990   :  { %881 = vrot.lane.b32.xlu2 %v1344_v2, %s1384_s27 }
0x1991   :  { %v1346_v7 = vpop.eup %1345 }
0x1992   :  { %v862_v9 = vadd.f32 1.0, %v1346_v7 }
0x1994   :  { %1347 = vrcp.f32 %v862_v9  ;;  %v874_v14 = vand.u32 2147483648, %v862_v9  ;;  %vm868_vm3 = vweird.f32 %v862_v9  ;;  %v872_v15 = vand.u32 2147483647, %v862_v9 }
0x1996   :  { %v875_v17 = vor.u32 1.1754944e-38, %v874_v14  ;;  %vm873_vm6 = vcmp.eq.f32.partialorder %v872_v15, 8.507059e+37 }
0x199a   :  { %v1348_v8 = vpop.eup %1347 }
0x199b   :  { %v864_v10 = vmul.f32 %v1348_v8, %v862_v9  ;;  %vm869_vm2 = vweird.f32 %v1348_v8 }
0x199c   :  { %vm870_vm4 = vmor %vm868_vm3, %vm869_vm2 }
0x199d   :  { %v865_v11 = vsub.f32 1.0, %v864_v10 }
0x199f   :  { %v866_v12 = vmul.f32 %v1348_v8, %v865_v11 }
0x19a1   :  { %v867_v13 = vadd.f32 %v1348_v8, %v866_v12 }
0x19a3   :  { %v871_v16 = vsel %vm870_vm4, %v1348_v8, %v867_v13 }
0x19a4   :  { %v876_v19 = vsel %vm873_vm6, %v875_v17, %v871_v16 }
0x19a5   :  { %v879_v21 = vmul.f32 %v876_v19, %v823_v57 }
0x19ea   :  { %v882_v18 = vpop.permute.xlu2 %881 }
0x19eb   :  { %v884_v20 = vmul.f32 %v882_v18, %v876_v19 }
0x19ed   :  { %886 = vrot.lane.b32.xlu0 %v884_v20, %s1385_s4 }
0x1a5f   :  { %v887_v22 = vpop.permute.xlu0 %886 }
0x1a60   :  { %v889_v23 = vadd.f32 %v887_v22, %v879_v21 }
0x1a62   :  { %1349 = vtanh.f32 %v889_v23 }
0x1a68   :  { %v1350_v24 = vpop.eup %1349 }
0x1a69   :  { %892 = vrot.lane.b32.xlu1 %v1350_v24, %s1384_s27  ;;  %v1033_v24 = vld [vmem:[#allocation3 + $0xc] sm:$0x3] }
0x1adb   :  { %v893_v25 = vpop.permute.xlu1 %892 }
0x1adc   :  { %v895_v26 = vmul.f32 %v893_v25, %v876_v19 }
0x1ade   :  { %897 = vrot.lane.b32.xlu2 %v895_v26, %s1385_s4 }
0x1b38   :  { %v898_v29 = vpop.permute.xlu2 %897 }
0x1b39   :  { %900 = vst.msk [vmem:[#allocation4 + $0x6] sm:$0x3] %vm701_vm8, %v898_v29  ;;  %1237 = vmatmul.msk.f32.vlgmr.msrb.gmra.mxu0 %vm123_vm5, %v898_v29 }
0x1b40   :  { %v1165_v30 = vld [vmem:[#allocation4] sm:$0xff] }
0x1b41   :  { %1245 = vmatmul.msk.f32.vlgmr.msra.gmra.mxu0 %vm123_vm5, %v1165_v30 }
0x1bb6   :  { %v921_v5 = vpop.f32.mrf.mxu0 }
0x1bb7   :  { %v924_v6 = vadd.f32 %v921_v5, %v901_v31 }
0x1bb9   :  { %1351 = vtanh.f32 %v924_v6  ;;  %v1238_v36 = vmul.f32 -1.442695, %v924_v6 }
0x1bbb   :  { %1353 = vpow2.f32 %v1238_v36 }
0x1bbe   :  { %v1198_v33 = vpop.f32.mrf.mxu0 }
0x1bbf   :  { %v1352_v34 = vpop.eup %1351  ;;  %v1199_v35 = vadd.f32 %v1627_v32, %v1198_v33 }
0x1bc0   :  { %947 = vrot.lane.b32.xlu0 %v1352_v34, %s1384_s27 }
0x1bc1   :  { %1204 = vst [vmem:[%s1671_s10] sm:$0xff] %v1199_v35  ;;  %v1354_v37 = vpop.eup %1353 }
0x1bc2   :  { %v928_v38 = vadd.f32 1.0, %v1354_v37 }
0x1bc4   :  { %1355 = vrcp.f32 %v928_v38  ;;  %v940_v44 = vand.u32 2147483648, %v928_v38  ;;  %vm934_vm0 = vweird.f32 %v928_v38  ;;  %v938_v45 = vand.u32 2147483647, %v928_v38 }
0x1bc6   :  { %v941_v47 = vor.u32 1.1754944e-38, %v940_v44  ;;  %vm939_vm10 = vcmp.eq.f32.partialorder %v938_v45, 8.507059e+37 }
0x1bca   :  { %v1356_v39 = vpop.eup %1355 }
0x1bcb   :  { %v930_v40 = vmul.f32 %v1356_v39, %v928_v38  ;;  %vm935_vm7 = vweird.f32 %v1356_v39 }
0x1bcc   :  { %vm936_vm9 = vmor %vm934_vm0, %vm935_vm7 }
0x1bcd   :  { %v931_v41 = vsub.f32 1.0, %v930_v40 }
0x1bcf   :  { %v932_v42 = vmul.f32 %v1356_v39, %v931_v41 }
0x1bd1   :  { %v933_v43 = vadd.f32 %v1356_v39, %v932_v42 }
0x1bd3   :  { %v937_v46 = vsel %vm936_vm9, %v1356_v39, %v933_v43 }
0x1bd4   :  { %v942_v49 = vsel %vm939_vm10, %v941_v47, %v937_v46  ;;  %v1099_v47 = vld [vmem:[#allocation3 + $0xe] sm:$0x3] }
0x1bd5   :  { %v945_v51 = vmul.f32 %v942_v49, %v889_v23 }
0x1c32   :  { %v948_v48 = vpop.permute.xlu0 %947 }
0x1c33   :  { %v950_v50 = vmul.f32 %v948_v48, %v942_v49 }
0x1c35   :  { %952 = vrot.lane.b32.xlu1 %v950_v50, %s1385_s4 }
0x1ca7   :  { %v953_v52 = vpop.permute.xlu1 %952 }
0x1ca8   :  { %v955_v53 = vadd.f32 %v953_v52, %v945_v51 }
0x1caa   :  { %1357 = vtanh.f32 %v955_v53 }
0x1cb0   :  { %v1358_v54 = vpop.eup %1357 }
0x1cb1   :  { %958 = vrot.lane.b32.xlu2 %v1358_v54, %s1384_s27 }
0x1d0b   :  { %v959_v55 = vpop.permute.xlu2 %958 }
0x1d0c   :  { %v961_v56 = vmul.f32 %v959_v55, %v942_v49 }
0x1d0e   :  { %963 = vrot.lane.b32.xlu0 %v961_v56, %s1385_s4 }
0x1d80   :  { %v964_v57 = vpop.permute.xlu0 %963 }
0x1d81   :  { %966 = vst.msk [vmem:[#allocation4 + $0x8] sm:$0x3] %vm701_vm8, %v964_v57  ;;  %1239 = vmatmul.msk.f32.vlgmr.msra.gmra.mxu1 %vm123_vm5, %v964_v57 }
0x1dfe   :  { %v987_v59 = vpop.f32.mrf.mxu1 }
0x1dff   :  { %v990_v60 = vadd.f32 %v987_v59, %v967_v58 }
0x1e01   :  { %1359 = vtanh.f32 %v990_v60  ;;  %v1240_v62 = vmul.f32 -1.442695, %v990_v60 }
0x1e03   :  { %1361 = vpow2.f32 %v1240_v62 }
0x1e07   :  { %v1360_v61 = vpop.eup %1359 }
0x1e08   :  { %1013 = vrot.lane.b32.xlu1 %v1360_v61, %s1384_s27 }
0x1e09   :  { %v1362_v63 = vpop.eup %1361 }
0x1e0a   :  { %v994_v0 = vadd.f32 1.0, %v1362_v63 }
0x1e0c   :  { %1363 = vrcp.f32 %v994_v0  ;;  %v1006_v10 = vand.u32 2147483648, %v994_v0  ;;  %vm1000_vm12 = vweird.f32 %v994_v0  ;;  %v1004_v11 = vand.u32 2147483647, %v994_v0 }
0x1e0e   :  { %v1007_v13 = vor.u32 1.1754944e-38, %v1006_v10  ;;  %vm1005_vm14 = vcmp.eq.f32.partialorder %v1004_v11, 8.507059e+37 }
0x1e12   :  { %v1364_v2 = vpop.eup %1363 }
0x1e13   :  { %v996_v4 = vmul.f32 %v1364_v2, %v994_v0  ;;  %vm1001_vm11 = vweird.f32 %v1364_v2 }
0x1e14   :  { %vm1002_vm13 = vmor %vm1000_vm12, %vm1001_vm11 }
0x1e15   :  { %v997_v7 = vsub.f32 1.0, %v996_v4 }
0x1e17   :  { %v998_v9 = vmul.f32 %v1364_v2, %v997_v7 }
0x1e19   :  { %v999_v8 = vadd.f32 %v1364_v2, %v998_v9 }
0x1e1b   :  { %v1003_v12 = vsel %vm1002_vm13, %v1364_v2, %v999_v8 }
0x1e1c   :  { %v1008_v15 = vsel %vm1005_vm14, %v1007_v13, %v1003_v12 }
0x1e1d   :  { %v1011_v17 = vmul.f32 %v1008_v15, %v955_v53 }
0x1e7a   :  { %v1014_v14 = vpop.permute.xlu1 %1013 }
0x1e7b   :  { %v1016_v16 = vmul.f32 %v1014_v14, %v1008_v15 }
0x1e7d   :  { %1018 = vrot.lane.b32.xlu2 %v1016_v16, %s1385_s4 }
0x1ed7   :  { %v1019_v18 = vpop.permute.xlu2 %1018 }
0x1ed8   :  { %v1021_v19 = vadd.f32 %v1019_v18, %v1011_v17 }
0x1eda   :  { %1365 = vtanh.f32 %v1021_v19 }
0x1ee0   :  { %v1366_v20 = vpop.eup %1365 }
0x1ee1   :  { %1024 = vrot.lane.b32.xlu0 %v1366_v20, %s1384_s27 }
0x1f53   :  { %v1025_v21 = vpop.permute.xlu0 %1024 }
0x1f54   :  { %v1027_v22 = vmul.f32 %v1025_v21, %v1008_v15 }
0x1f56   :  { %1029 = vrot.lane.b32.xlu1 %v1027_v22, %s1385_s4 }
0x1fc8   :  { %v1030_v23 = vpop.permute.xlu1 %1029 }
0x1fc9   :  { %1032 = vst.msk [vmem:[#allocation4 + $0xa] sm:$0x3] %vm701_vm8, %v1030_v23  ;;  %1241 = vmatmul.msk.f32.vlgmr.msra.gmra.mxu2 %vm123_vm5, %v1030_v23 }
0x204c   :  { %v1053_v25 = vpop.f32.mrf.mxu2 }
0x204d   :  { %v1056_v26 = vadd.f32 %v1053_v25, %v1033_v24 }
0x204f   :  { %1367 = vtanh.f32 %v1056_v26  ;;  %v1242_v1 = vmul.f32 -1.442695, %v1056_v26 }
0x2051   :  { %1369 = vpow2.f32 %v1242_v1 }
0x2055   :  { %v1368_v27 = vpop.eup %1367 }
0x2056   :  { %1079 = vrot.lane.b32.xlu2 %v1368_v27, %s1384_s27 }
0x2057   :  { %v1370_v28 = vpop.eup %1369 }
0x2058   :  { %v1060_v3 = vadd.f32 1.0, %v1370_v28 }
0x205a   :  { %1371 = vrcp.f32 %v1060_v3  ;;  %v1072_v33 = vand.u32 2147483648, %v1060_v3  ;;  %vm1066_vm1 = vweird.f32 %v1060_v3  ;;  %v1070_v34 = vand.u32 2147483647, %v1060_v3 }
0x205c   :  { %v1073_v36 = vor.u32 1.1754944e-38, %v1072_v33  ;;  %vm1071_vm3 = vcmp.eq.f32.partialorder %v1070_v34, 8.507059e+37 }
0x2060   :  { %v1372_v29 = vpop.eup %1371 }
0x2061   :  { %v1062_v30 = vmul.f32 %v1372_v29, %v1060_v3  ;;  %vm1067_vm15 = vweird.f32 %v1372_v29 }
0x2062   :  { %vm1068_vm2 = vmor %vm1066_vm1, %vm1067_vm15 }
0x2063   :  { %v1063_v31 = vsub.f32 1.0, %v1062_v30 }
0x2065   :  { %v1064_v5 = vmul.f32 %v1372_v29, %v1063_v31 }
0x2067   :  { %v1065_v6 = vadd.f32 %v1372_v29, %v1064_v5 }
0x2069   :  { %v1069_v35 = vsel %vm1068_vm2, %v1372_v29, %v1065_v6 }
0x206a   :  { %v1074_v38 = vsel %vm1071_vm3, %v1073_v36, %v1069_v35 }
0x206b   :  { %v1077_v40 = vmul.f32 %v1074_v38, %v1021_v19 }
0x20b0   :  { %v1080_v37 = vpop.permute.xlu2 %1079 }
0x20b1   :  { %v1082_v39 = vmul.f32 %v1080_v37, %v1074_v38 }
0x20b3   :  { %1084 = vrot.lane.b32.xlu0 %v1082_v39, %s1385_s4 }
0x2125   :  { %v1085_v41 = vpop.permute.xlu0 %1084 }
0x2126   :  { %v1087_v42 = vadd.f32 %v1085_v41, %v1077_v40 }
0x2128   :  { %1373 = vtanh.f32 %v1087_v42 }
0x212e   :  { %v1374_v43 = vpop.eup %1373 }
0x212f   :  { %1090 = vrot.lane.b32.xlu1 %v1374_v43, %s1384_s27 }
0x21a1   :  { %v1091_v44 = vpop.permute.xlu1 %1090 }
0x21a2   :  { %v1093_v45 = vmul.f32 %v1091_v44, %v1074_v38 }
0x21a4   :  { %1095 = vrot.lane.b32.xlu2 %v1093_v45, %s1385_s4 }
0x21fe   :  { %v1096_v46 = vpop.permute.xlu2 %1095 }
0x21ff   :  { %1098 = vst.msk [vmem:[#allocation4 + $0xc] sm:$0x3] %vm701_vm8, %v1096_v46  ;;  %1243 = vmatmul.msk.f32.vlgmr.msra.gmra.mxu3 %vm123_vm5, %v1096_v46 }
0x2282   :  { %v1119_v48 = vpop.f32.mrf.mxu3 }
0x2283   :  { %v1122_v49 = vadd.f32 %v1119_v48, %v1099_v47 }
0x2285   :  { %1375 = vtanh.f32 %v1122_v49  ;;  %v1244_v51 = vmul.f32 -1.442695, %v1122_v49 }
0x2287   :  { %1377 = vpow2.f32 %v1244_v51 }
0x228b   :  { %v1376_v50 = vpop.eup %1375 }
0x228c   :  { %1145 = vrot.lane.b32.xlu0 %v1376_v50, %s1384_s27 }
0x228d   :  { %v1378_v52 = vpop.eup %1377 }
0x228e   :  { %v1126_v53 = vadd.f32 1.0, %v1378_v52 }
0x2290   :  { %1379 = vrcp.f32 %v1126_v53  ;;  %v1138_v59 = vand.u32 2147483648, %v1126_v53  ;;  %vm1132_vm6 = vweird.f32 %v1126_v53  ;;  %v1136_v60 = vand.u32 2147483647, %v1126_v53 }
0x2292   :  { %v1139_v62 = vor.u32 1.1754944e-38, %v1138_v59  ;;  %vm1137_vm0 = vcmp.eq.f32.partialorder %v1136_v60, 8.507059e+37 }
0x2296   :  { %v1380_v54 = vpop.eup %1379 }
0x2297   :  { %v1128_v55 = vmul.f32 %v1380_v54, %v1126_v53  ;;  %vm1133_vm4 = vweird.f32 %v1380_v54 }
0x2298   :  { %vm1134_vm7 = vmor %vm1132_vm6, %vm1133_vm4 }
0x2299   :  { %v1129_v56 = vsub.f32 1.0, %v1128_v55 }
0x229b   :  { %v1130_v57 = vmul.f32 %v1380_v54, %v1129_v56 }
0x229d   :  { %v1131_v58 = vadd.f32 %v1380_v54, %v1130_v57 }
0x229f   :  { %v1135_v61 = vsel %vm1134_vm7, %v1380_v54, %v1131_v58 }
0x22a0   :  { %v1140_v0 = vsel %vm1137_vm0, %v1139_v62, %v1135_v61 }
0x22a1   :  { %v1143_v4 = vmul.f32 %v1140_v0, %v1087_v42 }
0x22fe   :  { %v1146_v63 = vpop.permute.xlu0 %1145 }
0x22ff   :  { %v1148_v2 = vmul.f32 %v1146_v63, %v1140_v0 }
0x2301   :  { %1150 = vrot.lane.b32.xlu1 %v1148_v2, %s1385_s4 }
0x2373   :  { %v1151_v7 = vpop.permute.xlu1 %1150 }
0x2374   :  { %v1153_v9 = vadd.f32 %v1151_v7, %v1143_v4 }
0x2376   :  { %1381 = vtanh.f32 %v1153_v9 }
0x237c   :  { %v1382_v8 = vpop.eup %1381 }
0x237d   :  { %1156 = vrot.lane.b32.xlu2 %v1382_v8, %s1384_s27 }
0x23d7   :  { %v1157_v10 = vpop.permute.xlu2 %1156 }
0x23d8   :  { %v1159_v11 = vmul.f32 %v1157_v10, %v1140_v0 }
0x23da   :  { %1161 = vrot.lane.b32.xlu0 %v1159_v11, %s1385_s4 }
0x244c   :  { %v1162_v12 = vpop.permute.xlu0 %1161 }
0x244d   :  { %1164 = vst.msk [vmem:[#allocation4 + $0xe] sm:$0x3] %vm701_vm8, %v1162_v12 }
0x2454   :  { %v1166_v13 = vld [vmem:[#allocation4 + $0x8] sm:$0xff] }
0x2455   :  { %1246 = vmatmul.msk.f32.gmra.mxu0 %vm123_vm5, %v1166_v13 }
0x24d2   :  { %v1201_v14 = vpop.f32.mrf.mxu0 }
0x24d3   :  { %v1202_v15 = vadd.f32 %v1627_v32, %v1201_v14 }
0x24d5   :  { %1205 = vst [vmem:[%s1671_s10 + $0x8] sm:$0xff] %v1202_v15 }

</bundles_post_ra>
